<compile_context>
chip_gen: v7x
topology: tpu7x:2x2x1
jax: 0.10.0
libtpu: 0.0.40
codegen_flags: <defaults>
</compile_context>

<pallas_src>
import numpy as np
import jax
import jax.numpy as jnp
from jax import lax
from jax.experimental import pallas as pl
from jax.experimental.pallas import tpu as pltpu


# ----------------------------------------------------------------------------
# Pallas kernel: fused LSTM recurrence + post-loop stacked 2-layer GCN
# ----------------------------------------------------------------------------

def _inundation_kernel(x_ref, h0_ref, c0_ref,
                       wih_ref, whh_ref, bl_ref,
                       adj_ref, wg1_ref, bg1_ref, wg2_ref, bg2_ref,
                       graph_ref, hn_ref, cn_ref,
                       hs_ref):
    # x_ref:   (T*N, F)  bf16  rows ordered (t, n)
    # wih_ref: (F, 4H)   bf16  fused gates i|f|g|o, i/f/o columns pre-scaled 0.5
    # whh_ref: (H, 4H)   bf16  (same pre-scale) ; bl_ref: (1, 4H) f32
    # adj_ref: (N, N)    bf16  normalized adjacency A_hat
    # wg1_ref: (T*H, T*G1) bf16  block-diag kron(I_T, W1) ; bg1_ref: (1, T*G1) f32
    # wg2_ref: (T*G1, T*G2) bf16 block-diag kron(I_T, W2) ; bg2_ref: (1, T*G2) f32
    # graph_ref: (N, T*G2) f32 ; hn_ref / cn_ref: (N, H) f32
    # hs_ref:  (N, T*H) f32 VMEM scratch of lane-stacked hidden states
    n_nodes = hn_ref.shape[0]
    hidden = whh_ref.shape[0]
    t_steps = x_ref.shape[0] // n_nodes

    # Hoisted input projection (+ fused bias) for ALL timesteps: one MXU op.
    gates_x = jnp.dot(x_ref[...], wih_ref[...],
                      preferred_element_type=jnp.float32) + bl_ref[...]

    h = h0_ref[...]                                    # (N, H) f32
    c = c0_ref[...]                                    # (N, H) f32

    # Fully unrolled (T is small and static); only the recurrent matmul and the
    # elementwise state update remain on the serial per-step critical path.
    for t in range(t_steps):
        gates = (gates_x[t * n_nodes:(t + 1) * n_nodes, :]
                 + jnp.dot(h.astype(jnp.bfloat16), whh_ref[...],
                           preferred_element_type=jnp.float32))   # (N, 4H)

        # One full-vreg tanh serves all four gates (i/f/o columns were
        # pre-scaled by 0.5 so sigmoid(v) = 0.5*(tanh(v/2)+1)).
        t_all = jnp.tanh(gates)
        i_g = 0.5 * (t_all[:, 0 * hidden:1 * hidden] + 1.0)
        f_g = 0.5 * (t_all[:, 1 * hidden:2 * hidden] + 1.0)
        g_g = t_all[:, 2 * hidden:3 * hidden]
        o_g = 0.5 * (t_all[:, 3 * hidden:4 * hidden] + 1.0)

        c = f_g * c + i_g * g_g
        h = o_g * jnp.tanh(c)

        # Lane-stacked stash (off the critical path): lanes [t*H, (t+1)*H).
        hs_ref[:, t * hidden:(t + 1) * hidden] = h

    hn_ref[...] = h
    cn_ref[...] = c

    # Post-loop 2-layer GCN on the stacked hidden states, 4 larger matmuls:
    #   g1 = relu(A_hat @ (H_stack kron(I,W1)) + b1) ; g2 = A_hat @ (g1 kron(I,W2)) + b2
    h_stack = hs_ref[...].astype(jnp.bfloat16)                       # (N, T*H)
    hw1 = jnp.dot(h_stack, wg1_ref[...],
                  preferred_element_type=jnp.float32)                # (N, T*G1)
    g1 = jnp.dot(adj_ref[...], hw1.astype(jnp.bfloat16),
                 preferred_element_type=jnp.float32) + bg1_ref[...]
    g1 = jnp.maximum(g1, 0.0)
    g1w2 = jnp.dot(g1.astype(jnp.bfloat16), wg2_ref[...],
                   preferred_element_type=jnp.float32)               # (N, T*G2)
    g2 = jnp.dot(adj_ref[...], g1w2.astype(jnp.bfloat16),
                 preferred_element_type=jnp.float32) + bg2_ref[...]

    graph_ref[...] = g2            # single lane-dense (N, T*G2) store


# ----------------------------------------------------------------------------
# Graph / parameter preparation (wrapper-side, plain XLA)
# ----------------------------------------------------------------------------

def _normalized_adjacency(edge_index, num_nodes):
    """Dense A_hat = D^-1/2 (A + I) D^-1/2 from a (2, E) edge_index (PyG gcn_norm)."""
    src = edge_index[0]
    dst = edge_index[1]
    a = jnp.zeros((num_nodes, num_nodes), jnp.float32)
    a = a.at[dst, src].set(1.0)                        # message src -> dst
    a = a + jnp.eye(num_nodes, dtype=jnp.float32)      # self loops
    deg = jnp.sum(a, axis=1)
    d_inv_sqrt = jnp.where(deg > 0.0, lax.rsqrt(deg), 0.0)
    return d_inv_sqrt[:, None] * a * d_inv_sqrt[None, :]


def _prepare_kernel_params(params, t_steps):
    """PyTorch-layout params -> fused / pre-scaled / block-diagonal kernel layout."""
    w_ih = jnp.asarray(params["lstm_w_ih"], jnp.float32)     # (4H, F), order i|f|g|o
    w_hh = jnp.asarray(params["lstm_w_hh"], jnp.float32)     # (4H, H)
    bias = jnp.asarray(params["lstm_b_ih"], jnp.float32) + \
           jnp.asarray(params["lstm_b_hh"], jnp.float32)     # (4H,)  b_ih + b_hh
    hdim = w_hh.shape[1]

    # Pre-scale the sigmoid gates (i, f, o) by 0.5 -> one full-vreg tanh in-kernel.
    scale = jnp.concatenate([jnp.full((2 * hdim,), 0.5, jnp.float32),
                             jnp.ones((hdim,), jnp.float32),
                             jnp.full((hdim,), 0.5, jnp.float32)])
    wih_k = (w_ih * scale[:, None]).T.astype(jnp.bfloat16)   # (F, 4H)
    whh_k = (w_hh * scale[:, None]).T.astype(jnp.bfloat16)   # (H, 4H)
    bl_k = (bias * scale)[None, :]                           # (1, 4H) f32

    w1 = jnp.asarray(params["gcn_w1"], jnp.float32)          # (H, G1)
    w2 = jnp.asarray(params["gcn_w2"], jnp.float32)          # (G1, G2)
    b1 = jnp.asarray(params["gcn_b1"], jnp.float32)          # (G1,)
    b2 = jnp.asarray(params["gcn_b2"], jnp.float32)          # (G2,)
    eye_t = jnp.eye(t_steps, dtype=jnp.float32)
    wg1_blk = jnp.kron(eye_t, w1).astype(jnp.bfloat16)       # (T*H, T*G1)
    wg2_blk = jnp.kron(eye_t, w2).astype(jnp.bfloat16)       # (T*G1, T*G2)
    bg1_til = jnp.tile(b1[None, :], (1, t_steps))            # (1, T*G1)
    bg2_til = jnp.tile(b2[None, :], (1, t_steps))            # (1, T*G2)
    return wih_k, whh_k, bl_k, wg1_blk, bg1_til, wg2_blk, bg2_til


# ----------------------------------------------------------------------------
# Forward wrapper
# ----------------------------------------------------------------------------

def inundation_block_forward(params, x, edge_index, state=None):
    """x: (N_nodes, T, F) batch_first node time series.

    Returns (graph, (hidden, cell)):
      graph:  (N_nodes, T, gcn_out)   -- torch.stack(steps, dim=1)
      hidden: (1, N_nodes, H) ; cell: (1, N_nodes, H)
    """
    n_nodes, t_steps, f_in = x.shape
    hidden = params["lstm_w_hh"].shape[1]
    g_hid = params["gcn_w1"].shape[1]
    g_out = params["gcn_w2"].shape[1]

    if state is None:
        h0 = jnp.zeros((n_nodes, hidden), jnp.float32)
        c0 = jnp.zeros((n_nodes, hidden), jnp.float32)
    else:
        h0 = state[0].reshape(n_nodes, hidden).astype(jnp.float32)
        c0 = state[1].reshape(n_nodes, hidden).astype(jnp.float32)

    adj = _normalized_adjacency(edge_index, n_nodes).astype(jnp.bfloat16)
    # Time-major, flattened to rows indexed (t, n).
    x_flat = jnp.transpose(x, (1, 0, 2)).reshape(t_steps * n_nodes, f_in)
    x_flat = x_flat.astype(jnp.bfloat16)

    wih_k, whh_k, bl_k, wg1_blk, bg1_til, wg2_blk, bg2_til = \
        _prepare_kernel_params(params, t_steps)

    vmem = pltpu.MemorySpace.VMEM
    graph_flat, h_n, c_n = pl.pallas_call(
        _inundation_kernel,
        out_shape=(jax.ShapeDtypeStruct((n_nodes, t_steps * g_out), jnp.float32),
                   jax.ShapeDtypeStruct((n_nodes, hidden), jnp.float32),
                   jax.ShapeDtypeStruct((n_nodes, hidden), jnp.float32)),
        in_specs=[pl.BlockSpec(memory_space=vmem)] * 11,
        out_specs=(pl.BlockSpec(memory_space=vmem),
                   pl.BlockSpec(memory_space=vmem),
                   pl.BlockSpec(memory_space=vmem)),
        scratch_shapes=[pltpu.VMEM((n_nodes, t_steps * hidden), jnp.float32)],
    )(x_flat, h0, c0, wih_k, whh_k, bl_k,
      adj, wg1_blk, bg1_til, wg2_blk, bg2_til)

    graph = graph_flat.reshape(n_nodes, t_steps, g_out)
    return graph, (h_n[None], c_n[None])


# ----------------------------------------------------------------------------
# Pure-JAX reference (mirrors kernel numerics: bf16 MXU operands, f32 accum)
# ----------------------------------------------------------------------------

def _reference_forward(params, x, edge_index, state=None):
    n_nodes, t_steps, _ = x.shape
    bf = jnp.bfloat16
    w_ih = jnp.asarray(params["lstm_w_ih"], jnp.float32)
    w_hh = jnp.asarray(params["lstm_w_hh"], jnp.float32)
    bias = jnp.asarray(params["lstm_b_ih"], jnp.float32) + \
           jnp.asarray(params["lstm_b_hh"], jnp.float32)
    hdim = w_hh.shape[1]
    w1 = jnp.asarray(params["gcn_w1"], jnp.float32).astype(bf)
    b1 = jnp.asarray(params["gcn_b1"], jnp.float32)
    w2 = jnp.asarray(params["gcn_w2"], jnp.float32).astype(bf)
    b2 = jnp.asarray(params["gcn_b2"], jnp.float32)
    adj = _normalized_adjacency(edge_index, n_nodes).astype(bf)
    wih_t = w_ih.T.astype(bf)
    whh_t = w_hh.T.astype(bf)

    if state is None:
        h = jnp.zeros((n_nodes, hdim), jnp.float32)
        c = jnp.zeros((n_nodes, hdim), jnp.float32)
    else:
        h = state[0].reshape(n_nodes, hdim).astype(jnp.float32)
        c = state[1].reshape(n_nodes, hdim).astype(jnp.float32)

    steps = []
    for t in range(t_steps):
        x_t = x[:, t, :].astype(bf)
        gates = (jnp.dot(x_t, wih_t, preferred_element_type=jnp.float32)
                 + jnp.dot(h.astype(bf), whh_t, preferred_element_type=jnp.float32)
                 + bias[None, :])
        i_g = jax.nn.sigmoid(gates[:, 0 * hdim:1 * hdim])
        f_g = jax.nn.sigmoid(gates[:, 1 * hdim:2 * hdim])
        g_g = jnp.tanh(gates[:, 2 * hdim:3 * hdim])
        o_g = jax.nn.sigmoid(gates[:, 3 * hdim:4 * hdim])
        c = f_g * c + i_g * g_g
        h = o_g * jnp.tanh(c)
        hw1 = jnp.dot(h.astype(bf), w1, preferred_element_type=jnp.float32)
        g1 = jnp.dot(adj, hw1.astype(bf), preferred_element_type=jnp.float32) + b1[None, :]
        g1 = jnp.maximum(g1, 0.0)
        g1w2 = jnp.dot(g1.astype(bf), w2, preferred_element_type=jnp.float32)
        g2 = jnp.dot(adj, g1w2.astype(bf), preferred_element_type=jnp.float32) + b2[None, :]
        steps.append(g2)
    return jnp.stack(steps, axis=1), (h[None], c[None])


# ----------------------------------------------------------------------------
# Deterministic parameter construction (PyTorch layout, gate order i|f|g|o)
# ----------------------------------------------------------------------------

def make_params(key, f_in, h_lstm, g_hidden, g_out):
    ks = jax.random.split(key, 8)
    s = 0.1
    return {
        "lstm_w_ih": s * jax.random.normal(ks[0], (4 * h_lstm, f_in), jnp.float32),
        "lstm_w_hh": s * jax.random.normal(ks[1], (4 * h_lstm, h_lstm), jnp.float32),
        "lstm_b_ih": s * jax.random.normal(ks[2], (4 * h_lstm,), jnp.float32),
        "lstm_b_hh": s * jax.random.normal(ks[3], (4 * h_lstm,), jnp.float32),
        "gcn_w1": s * jax.random.normal(ks[4], (h_lstm, g_hidden), jnp.float32),
        "gcn_b1": s * jax.random.normal(ks[5], (g_hidden,), jnp.float32),
        "gcn_w2": s * jax.random.normal(ks[6], (g_hidden, g_out), jnp.float32),
        "gcn_b2": s * jax.random.normal(ks[7], (g_out,), jnp.float32),
    }


# ----------------------------------------------------------------------------
# main
# ----------------------------------------------------------------------------

if __name__ == "__main__":
    N_NODES, T_STEPS = 8, 8
    F_IN = 4
    H_LSTM = 32                     # 4H = 128 -> one full lane tile per gate matmul
    G_HIDDEN, G_OUT = 32, 16        # T*G_OUT = 128 -> lane-dense graph output

    key = jax.random.PRNGKey(0)
    k_x, k_p = jax.random.split(key)

    x = jax.random.normal(k_x, (N_NODES, T_STEPS, F_IN), jnp.float32)

    # Deterministic bidirectional ring graph over the basin nodes.
    src = np.arange(N_NODES)
    dst = (src + 1) % N_NODES
    edge_index = jnp.asarray(
        np.stack([np.concatenate([src, dst]), np.concatenate([dst, src])]),
        dtype=jnp.int32)                                   # (2, 2*N_NODES)

    params = make_params(k_p, F_IN, H_LSTM, G_HIDDEN, G_OUT)

    fwd = jax.jit(inundation_block_forward)
    graph, (hidden, cell) = jax.block_until_ready(fwd(params, x, edge_index))

    assert graph.shape == (N_NODES, T_STEPS, G_OUT)
    assert hidden.shape == (1, N_NODES, H_LSTM)
    assert cell.shape == (1, N_NODES, H_LSTM)
    assert bool(jnp.all(jnp.isfinite(graph)))
    assert bool(jnp.all(jnp.isfinite(hidden)))
    assert bool(jnp.all(jnp.isfinite(cell)))

    # Tolerance check against a pure-JAX reference of the same module.
    g_ref, (h_ref, c_ref) = _reference_forward(params, x, edge_index)
    assert bool(jnp.allclose(graph, g_ref, atol=2e-2, rtol=0.0))
    assert bool(jnp.allclose(hidden, h_ref, atol=2e-2, rtol=0.0))
    assert bool(jnp.allclose(cell, c_ref, atol=2e-2, rtol=0.0))

    print("KERNEL_OK")
</pallas_src>

<mosaic_0001>
module attributes {stable_mosaic.version = 11 : i64} {
  func.func @_inundation_kernel(%arg0: memref<64x4xbf16, #tpu.memory_space<vmem>>, %arg1: memref<8x32xf32, #tpu.memory_space<vmem>>, %arg2: memref<8x32xf32, #tpu.memory_space<vmem>>, %arg3: memref<4x128xbf16, #tpu.memory_space<vmem>>, %arg4: memref<32x128xbf16, #tpu.memory_space<vmem>>, %arg5: memref<1x128xf32, #tpu.memory_space<vmem>>, %arg6: memref<8x8xbf16, #tpu.memory_space<vmem>>, %arg7: memref<256x256xbf16, #tpu.memory_space<vmem>>, %arg8: memref<1x256xf32, #tpu.memory_space<vmem>>, %arg9: memref<256x128xbf16, #tpu.memory_space<vmem>>, %arg10: memref<1x128xf32, #tpu.memory_space<vmem>>, %arg11: memref<8x128xf32, #tpu.memory_space<vmem>>, %arg12: memref<8x32xf32, #tpu.memory_space<vmem>>, %arg13: memref<8x32xf32, #tpu.memory_space<vmem>>, %arg14: memref<8x256xf32, #tpu.memory_space<vmem>>) attributes {dimension_semantics = [], scalar_prefetch = 0 : i64, scratch_operands = 1 : i64, tpu.core_type = #tpu.core_type<tc>} {
    %c0 = arith.constant 0 : index
    %c0_0 = arith.constant 0 : index
    %0 = vector.load %arg0[%c0, %c0_0] : memref<64x4xbf16, #tpu.memory_space<vmem>>, vector<64x4xbf16>
    %c0_1 = arith.constant 0 : index
    %c0_2 = arith.constant 0 : index
    %1 = vector.load %arg3[%c0_1, %c0_2] : memref<4x128xbf16, #tpu.memory_space<vmem>>, vector<4x128xbf16>
    %cst = arith.constant dense<0.000000e+00> : vector<64x128xf32>
    %2 = tpu.matmul %0, %1, %cst {dimension_numbers = #tpu.dot_dimension_numbers<[1], [0], [0], [1], [0, 0, 1, 1], [], []>} : vector<64x4xbf16>, vector<4x128xbf16>, vector<64x128xf32> -> vector<64x128xf32>
    %c0_3 = arith.constant 0 : index
    %c0_4 = arith.constant 0 : index
    %3 = vector.load %arg5[%c0_3, %c0_4] : memref<1x128xf32, #tpu.memory_space<vmem>>, vector<1x128xf32>
    %4 = vector.broadcast %3 : vector<1x128xf32> to vector<64x128xf32>
    %5 = arith.addf %2, %4 : vector<64x128xf32>
    %c0_5 = arith.constant 0 : index
    %c0_6 = arith.constant 0 : index
    %6 = vector.load %arg1[%c0_5, %c0_6] : memref<8x32xf32, #tpu.memory_space<vmem>>, vector<8x32xf32>
    %c0_7 = arith.constant 0 : index
    %c0_8 = arith.constant 0 : index
    %7 = vector.load %arg2[%c0_7, %c0_8] : memref<8x32xf32, #tpu.memory_space<vmem>>, vector<8x32xf32>
    %8 = vector.extract_strided_slice %5 {offsets = [0, 0], sizes = [8, 128], strides = [1, 1]} : vector<64x128xf32> to vector<8x128xf32>
    %9 = arith.truncf %6 : vector<8x32xf32> to vector<8x32xbf16>
    %c0_9 = arith.constant 0 : index
    %c0_10 = arith.constant 0 : index
    %10 = vector.load %arg4[%c0_9, %c0_10] : memref<32x128xbf16, #tpu.memory_space<vmem>>, vector<32x128xbf16>
    %cst_11 = arith.constant dense<0.000000e+00> : vector<8x128xf32>
    %11 = tpu.matmul %9, %10, %cst_11 {dimension_numbers = #tpu.dot_dimension_numbers<[1], [0], [0], [1], [0, 0, 1, 1], [], []>} : vector<8x32xbf16>, vector<32x128xbf16>, vector<8x128xf32> -> vector<8x128xf32>
    %12 = arith.addf %8, %11 : vector<8x128xf32>
    %13 = math.tanh %12 : vector<8x128xf32>
    %14 = vector.extract_strided_slice %13 {offsets = [0, 0], sizes = [8, 32], strides = [1, 1]} : vector<8x128xf32> to vector<8x32xf32>
    %cst_12 = arith.constant 1.000000e+00 : f32
    %15 = vector.broadcast %cst_12 : f32 to vector<8x32xf32>
    %16 = arith.addf %14, %15 : vector<8x32xf32>
    %cst_13 = arith.constant 5.000000e-01 : f32
    %17 = vector.broadcast %cst_13 : f32 to vector<8x32xf32>
    %18 = arith.mulf %17, %16 : vector<8x32xf32>
    %19 = vector.extract_strided_slice %13 {offsets = [0, 32], sizes = [8, 32], strides = [1, 1]} : vector<8x128xf32> to vector<8x32xf32>
    %cst_14 = arith.constant 1.000000e+00 : f32
    %20 = vector.broadcast %cst_14 : f32 to vector<8x32xf32>
    %21 = arith.addf %19, %20 : vector<8x32xf32>
    %cst_15 = arith.constant 5.000000e-01 : f32
    %22 = vector.broadcast %cst_15 : f32 to vector<8x32xf32>
    %23 = arith.mulf %22, %21 : vector<8x32xf32>
    %24 = vector.extract_strided_slice %13 {offsets = [0, 64], sizes = [8, 32], strides = [1, 1]} : vector<8x128xf32> to vector<8x32xf32>
    %25 = vector.extract_strided_slice %13 {offsets = [0, 96], sizes = [8, 32], strides = [1, 1]} : vector<8x128xf32> to vector<8x32xf32>
    %cst_16 = arith.constant 1.000000e+00 : f32
    %26 = vector.broadcast %cst_16 : f32 to vector<8x32xf32>
    %27 = arith.addf %25, %26 : vector<8x32xf32>
    %cst_17 = arith.constant 5.000000e-01 : f32
    %28 = vector.broadcast %cst_17 : f32 to vector<8x32xf32>
    %29 = arith.mulf %28, %27 : vector<8x32xf32>
    %30 = arith.mulf %23, %7 : vector<8x32xf32>
    %31 = arith.mulf %18, %24 : vector<8x32xf32>
    %32 = arith.addf %30, %31 : vector<8x32xf32>
    %33 = math.tanh %32 : vector<8x32xf32>
    %34 = arith.mulf %29, %33 : vector<8x32xf32>
    %c0_18 = arith.constant 0 : index
    %c0_19 = arith.constant 0 : index
    %35 = vector.load %arg14[%c0_18, %c0_19] : memref<8x256xf32, #tpu.memory_space<vmem>>, vector<8x32xf32>
    tpu.vector_store %arg14[%c0_18, %c0_19], %34 {strides = array<i32>} : memref<8x256xf32, #tpu.memory_space<vmem>>, vector<8x32xf32>,
    %36 = vector.extract_strided_slice %5 {offsets = [8, 0], sizes = [8, 128], strides = [1, 1]} : vector<64x128xf32> to vector<8x128xf32>
    %37 = arith.truncf %34 : vector<8x32xf32> to vector<8x32xbf16>
    %c0_20 = arith.constant 0 : index
    %c0_21 = arith.constant 0 : index
    %38 = vector.load %arg4[%c0_20, %c0_21] : memref<32x128xbf16, #tpu.memory_space<vmem>>, vector<32x128xbf16>
    %cst_22 = arith.constant dense<0.000000e+00> : vector<8x128xf32>
    %39 = tpu.matmul %37, %38, %cst_22 {dimension_numbers = #tpu.dot_dimension_numbers<[1], [0], [0], [1], [0, 0, 1, 1], [], []>} : vector<8x32xbf16>, vector<32x128xbf16>, vector<8x128xf32> -> vector<8x128xf32>
    %40 = arith.addf %36, %39 : vector<8x128xf32>
    %41 = math.tanh %40 : vector<8x128xf32>
    %42 = vector.extract_strided_slice %41 {offsets = [0, 0], sizes = [8, 32], strides = [1, 1]} : vector<8x128xf32> to vector<8x32xf32>
    %cst_23 = arith.constant 1.000000e+00 : f32
    %43 = vector.broadcast %cst_23 : f32 to vector<8x32xf32>
    %44 = arith.addf %42, %43 : vector<8x32xf32>
    %cst_24 = arith.constant 5.000000e-01 : f32
    %45 = vector.broadcast %cst_24 : f32 to vector<8x32xf32>
    %46 = arith.mulf %45, %44 : vector<8x32xf32>
    %47 = vector.extract_strided_slice %41 {offsets = [0, 32], sizes = [8, 32], strides = [1, 1]} : vector<8x128xf32> to vector<8x32xf32>
    %cst_25 = arith.constant 1.000000e+00 : f32
    %48 = vector.broadcast %cst_25 : f32 to vector<8x32xf32>
    %49 = arith.addf %47, %48 : vector<8x32xf32>
    %cst_26 = arith.constant 5.000000e-01 : f32
    %50 = vector.broadcast %cst_26 : f32 to vector<8x32xf32>
    %51 = arith.mulf %50, %49 : vector<8x32xf32>
    %52 = vector.extract_strided_slice %41 {offsets = [0, 64], sizes = [8, 32], strides = [1, 1]} : vector<8x128xf32> to vector<8x32xf32>
    %53 = vector.extract_strided_slice %41 {offsets = [0, 96], sizes = [8, 32], strides = [1, 1]} : vector<8x128xf32> to vector<8x32xf32>
    %cst_27 = arith.constant 1.000000e+00 : f32
    %54 = vector.broadcast %cst_27 : f32 to vector<8x32xf32>
    %55 = arith.addf %53, %54 : vector<8x32xf32>
    %cst_28 = arith.constant 5.000000e-01 : f32
    %56 = vector.broadcast %cst_28 : f32 to vector<8x32xf32>
    %57 = arith.mulf %56, %55 : vector<8x32xf32>
    %58 = arith.mulf %51, %32 : vector<8x32xf32>
    %59 = arith.mulf %46, %52 : vector<8x32xf32>
    %60 = arith.addf %58, %59 : vector<8x32xf32>
    %61 = math.tanh %60 : vector<8x32xf32>
    %62 = arith.mulf %57, %61 : vector<8x32xf32>
    %c0_29 = arith.constant 0 : index
    %c32 = arith.constant 32 : index
    %63 = vector.load %arg14[%c0_29, %c32] : memref<8x256xf32, #tpu.memory_space<vmem>>, vector<8x32xf32>
    tpu.vector_store %arg14[%c0_29, %c32], %62 {strides = array<i32>} : memref<8x256xf32, #tpu.memory_space<vmem>>, vector<8x32xf32>,
    %64 = vector.extract_strided_slice %5 {offsets = [16, 0], sizes = [8, 128], strides = [1, 1]} : vector<64x128xf32> to vector<8x128xf32>
    %65 = arith.truncf %62 : vector<8x32xf32> to vector<8x32xbf16>
    %c0_30 = arith.constant 0 : index
    %c0_31 = arith.constant 0 : index
    %66 = vector.load %arg4[%c0_30, %c0_31] : memref<32x128xbf16, #tpu.memory_space<vmem>>, vector<32x128xbf16>
    %cst_32 = arith.constant dense<0.000000e+00> : vector<8x128xf32>
    %67 = tpu.matmul %65, %66, %cst_32 {dimension_numbers = #tpu.dot_dimension_numbers<[1], [0], [0], [1], [0, 0, 1, 1], [], []>} : vector<8x32xbf16>, vector<32x128xbf16>, vector<8x128xf32> -> vector<8x128xf32>
    %68 = arith.addf %64, %67 : vector<8x128xf32>
    %69 = math.tanh %68 : vector<8x128xf32>
    %70 = vector.extract_strided_slice %69 {offsets = [0, 0], sizes = [8, 32], strides = [1, 1]} : vector<8x128xf32> to vector<8x32xf32>
    %cst_33 = arith.constant 1.000000e+00 : f32
    %71 = vector.broadcast %cst_33 : f32 to vector<8x32xf32>
    %72 = arith.addf %70, %71 : vector<8x32xf32>
    %cst_34 = arith.constant 5.000000e-01 : f32
    %73 = vector.broadcast %cst_34 : f32 to vector<8x32xf32>
    %74 = arith.mulf %73, %72 : vector<8x32xf32>
    %75 = vector.extract_strided_slice %69 {offsets = [0, 32], sizes = [8, 32], strides = [1, 1]} : vector<8x128xf32> to vector<8x32xf32>
    %cst_35 = arith.constant 1.000000e+00 : f32
    %76 = vector.broadcast %cst_35 : f32 to vector<8x32xf32>
    %77 = arith.addf %75, %76 : vector<8x32xf32>
    %cst_36 = arith.constant 5.000000e-01 : f32
    %78 = vector.broadcast %cst_36 : f32 to vector<8x32xf32>
    %79 = arith.mulf %78, %77 : vector<8x32xf32>
    %80 = vector.extract_strided_slice %69 {offsets = [0, 64], sizes = [8, 32], strides = [1, 1]} : vector<8x128xf32> to vector<8x32xf32>
    %81 = vector.extract_strided_slice %69 {offsets = [0, 96], sizes = [8, 32], strides = [1, 1]} : vector<8x128xf32> to vector<8x32xf32>
    %cst_37 = arith.constant 1.000000e+00 : f32
    %82 = vector.broadcast %cst_37 : f32 to vector<8x32xf32>
    %83 = arith.addf %81, %82 : vector<8x32xf32>
    %cst_38 = arith.constant 5.000000e-01 : f32
    %84 = vector.broadcast %cst_38 : f32 to vector<8x32xf32>
    %85 = arith.mulf %84, %83 : vector<8x32xf32>
    %86 = arith.mulf %79, %60 : vector<8x32xf32>
    %87 = arith.mulf %74, %80 : vector<8x32xf32>
    %88 = arith.addf %86, %87 : vector<8x32xf32>
    %89 = math.tanh %88 : vector<8x32xf32>
    %90 = arith.mulf %85, %89 : vector<8x32xf32>
    %c0_39 = arith.constant 0 : index
    %c64 = arith.constant 64 : index
    %91 = vector.load %arg14[%c0_39, %c64] : memref<8x256xf32, #tpu.memory_space<vmem>>, vector<8x32xf32>
    tpu.vector_store %arg14[%c0_39, %c64], %90 {strides = array<i32>} : memref<8x256xf32, #tpu.memory_space<vmem>>, vector<8x32xf32>,
    %92 = vector.extract_strided_slice %5 {offsets = [24, 0], sizes = [8, 128], strides = [1, 1]} : vector<64x128xf32> to vector<8x128xf32>
    %93 = arith.truncf %90 : vector<8x32xf32> to vector<8x32xbf16>
    %c0_40 = arith.constant 0 : index
    %c0_41 = arith.constant 0 : index
    %94 = vector.load %arg4[%c0_40, %c0_41] : memref<32x128xbf16, #tpu.memory_space<vmem>>, vector<32x128xbf16>
    %cst_42 = arith.constant dense<0.000000e+00> : vector<8x128xf32>
    %95 = tpu.matmul %93, %94, %cst_42 {dimension_numbers = #tpu.dot_dimension_numbers<[1], [0], [0], [1], [0, 0, 1, 1], [], []>} : vector<8x32xbf16>, vector<32x128xbf16>, vector<8x128xf32> -> vector<8x128xf32>
    %96 = arith.addf %92, %95 : vector<8x128xf32>
    %97 = math.tanh %96 : vector<8x128xf32>
    %98 = vector.extract_strided_slice %97 {offsets = [0, 0], sizes = [8, 32], strides = [1, 1]} : vector<8x128xf32> to vector<8x32xf32>
    %cst_43 = arith.constant 1.000000e+00 : f32
    %99 = vector.broadcast %cst_43 : f32 to vector<8x32xf32>
    %100 = arith.addf %98, %99 : vector<8x32xf32>
    %cst_44 = arith.constant 5.000000e-01 : f32
    %101 = vector.broadcast %cst_44 : f32 to vector<8x32xf32>
    %102 = arith.mulf %101, %100 : vector<8x32xf32>
    %103 = vector.extract_strided_slice %97 {offsets = [0, 32], sizes = [8, 32], strides = [1, 1]} : vector<8x128xf32> to vector<8x32xf32>
    %cst_45 = arith.constant 1.000000e+00 : f32
    %104 = vector.broadcast %cst_45 : f32 to vector<8x32xf32>
    %105 = arith.addf %103, %104 : vector<8x32xf32>
    %cst_46 = arith.constant 5.000000e-01 : f32
    %106 = vector.broadcast %cst_46 : f32 to vector<8x32xf32>
    %107 = arith.mulf %106, %105 : vector<8x32xf32>
    %108 = vector.extract_strided_slice %97 {offsets = [0, 64], sizes = [8, 32], strides = [1, 1]} : vector<8x128xf32> to vector<8x32xf32>
    %109 = vector.extract_strided_slice %97 {offsets = [0, 96], sizes = [8, 32], strides = [1, 1]} : vector<8x128xf32> to vector<8x32xf32>
    %cst_47 = arith.constant 1.000000e+00 : f32
    %110 = vector.broadcast %cst_47 : f32 to vector<8x32xf32>
    %111 = arith.addf %109, %110 : vector<8x32xf32>
    %cst_48 = arith.constant 5.000000e-01 : f32
    %112 = vector.broadcast %cst_48 : f32 to vector<8x32xf32>
    %113 = arith.mulf %112, %111 : vector<8x32xf32>
    %114 = arith.mulf %107, %88 : vector<8x32xf32>
    %115 = arith.mulf %102, %108 : vector<8x32xf32>
    %116 = arith.addf %114, %115 : vector<8x32xf32>
    %117 = math.tanh %116 : vector<8x32xf32>
    %118 = arith.mulf %113, %117 : vector<8x32xf32>
    %c0_49 = arith.constant 0 : index
    %c96 = arith.constant 96 : index
    %119 = vector.load %arg14[%c0_49, %c96] : memref<8x256xf32, #tpu.memory_space<vmem>>, vector<8x32xf32>
    tpu.vector_store %arg14[%c0_49, %c96], %118 {strides = array<i32>} : memref<8x256xf32, #tpu.memory_space<vmem>>, vector<8x32xf32>,
    %120 = vector.extract_strided_slice %5 {offsets = [32, 0], sizes = [8, 128], strides = [1, 1]} : vector<64x128xf32> to vector<8x128xf32>
    %121 = arith.truncf %118 : vector<8x32xf32> to vector<8x32xbf16>
    %c0_50 = arith.constant 0 : index
    %c0_51 = arith.constant 0 : index
    %122 = vector.load %arg4[%c0_50, %c0_51] : memref<32x128xbf16, #tpu.memory_space<vmem>>, vector<32x128xbf16>
    %cst_52 = arith.constant dense<0.000000e+00> : vector<8x128xf32>
    %123 = tpu.matmul %121, %122, %cst_52 {dimension_numbers = #tpu.dot_dimension_numbers<[1], [0], [0], [1], [0, 0, 1, 1], [], []>} : vector<8x32xbf16>, vector<32x128xbf16>, vector<8x128xf32> -> vector<8x128xf32>
    %124 = arith.addf %120, %123 : vector<8x128xf32>
    %125 = math.tanh %124 : vector<8x128xf32>
    %126 = vector.extract_strided_slice %125 {offsets = [0, 0], sizes = [8, 32], strides = [1, 1]} : vector<8x128xf32> to vector<8x32xf32>
    %cst_53 = arith.constant 1.000000e+00 : f32
    %127 = vector.broadcast %cst_53 : f32 to vector<8x32xf32>
    %128 = arith.addf %126, %127 : vector<8x32xf32>
    %cst_54 = arith.constant 5.000000e-01 : f32
    %129 = vector.broadcast %cst_54 : f32 to vector<8x32xf32>
    %130 = arith.mulf %129, %128 : vector<8x32xf32>
    %131 = vector.extract_strided_slice %125 {offsets = [0, 32], sizes = [8, 32], strides = [1, 1]} : vector<8x128xf32> to vector<8x32xf32>
    %cst_55 = arith.constant 1.000000e+00 : f32
    %132 = vector.broadcast %cst_55 : f32 to vector<8x32xf32>
    %133 = arith.addf %131, %132 : vector<8x32xf32>
    %cst_56 = arith.constant 5.000000e-01 : f32
    %134 = vector.broadcast %cst_56 : f32 to vector<8x32xf32>
    %135 = arith.mulf %134, %133 : vector<8x32xf32>
    %136 = vector.extract_strided_slice %125 {offsets = [0, 64], sizes = [8, 32], strides = [1, 1]} : vector<8x128xf32> to vector<8x32xf32>
    %137 = vector.extract_strided_slice %125 {offsets = [0, 96], sizes = [8, 32], strides = [1, 1]} : vector<8x128xf32> to vector<8x32xf32>
    %cst_57 = arith.constant 1.000000e+00 : f32
    %138 = vector.broadcast %cst_57 : f32 to vector<8x32xf32>
    %139 = arith.addf %137, %138 : vector<8x32xf32>
    %cst_58 = arith.constant 5.000000e-01 : f32
    %140 = vector.broadcast %cst_58 : f32 to vector<8x32xf32>
    %141 = arith.mulf %140, %139 : vector<8x32xf32>
    %142 = arith.mulf %135, %116 : vector<8x32xf32>
    %143 = arith.mulf %130, %136 : vector<8x32xf32>
    %144 = arith.addf %142, %143 : vector<8x32xf32>
    %145 = math.tanh %144 : vector<8x32xf32>
    %146 = arith.mulf %141, %145 : vector<8x32xf32>
    %c0_59 = arith.constant 0 : index
    %c128 = arith.constant 128 : index
    %147 = vector.load %arg14[%c0_59, %c128] : memref<8x256xf32, #tpu.memory_space<vmem>>, vector<8x32xf32>
    tpu.vector_store %arg14[%c0_59, %c128], %146 {strides = array<i32>} : memref<8x256xf32, #tpu.memory_space<vmem>>, vector<8x32xf32>,
    %148 = vector.extract_strided_slice %5 {offsets = [40, 0], sizes = [8, 128], strides = [1, 1]} : vector<64x128xf32> to vector<8x128xf32>
    %149 = arith.truncf %146 : vector<8x32xf32> to vector<8x32xbf16>
    %c0_60 = arith.constant 0 : index
    %c0_61 = arith.constant 0 : index
    %150 = vector.load %arg4[%c0_60, %c0_61] : memref<32x128xbf16, #tpu.memory_space<vmem>>, vector<32x128xbf16>
    %cst_62 = arith.constant dense<0.000000e+00> : vector<8x128xf32>
    %151 = tpu.matmul %149, %150, %cst_62 {dimension_numbers = #tpu.dot_dimension_numbers<[1], [0], [0], [1], [0, 0, 1, 1], [], []>} : vector<8x32xbf16>, vector<32x128xbf16>, vector<8x128xf32> -> vector<8x128xf32>
    %152 = arith.addf %148, %151 : vector<8x128xf32>
    %153 = math.tanh %152 : vector<8x128xf32>
    %154 = vector.extract_strided_slice %153 {offsets = [0, 0], sizes = [8, 32], strides = [1, 1]} : vector<8x128xf32> to vector<8x32xf32>
    %cst_63 = arith.constant 1.000000e+00 : f32
    %155 = vector.broadcast %cst_63 : f32 to vector<8x32xf32>
    %156 = arith.addf %154, %155 : vector<8x32xf32>
    %cst_64 = arith.constant 5.000000e-01 : f32
    %157 = vector.broadcast %cst_64 : f32 to vector<8x32xf32>
    %158 = arith.mulf %157, %156 : vector<8x32xf32>
    %159 = vector.extract_strided_slice %153 {offsets = [0, 32], sizes = [8, 32], strides = [1, 1]} : vector<8x128xf32> to vector<8x32xf32>
    %cst_65 = arith.constant 1.000000e+00 : f32
    %160 = vector.broadcast %cst_65 : f32 to vector<8x32xf32>
    %161 = arith.addf %159, %160 : vector<8x32xf32>
    %cst_66 = arith.constant 5.000000e-01 : f32
    %162 = vector.broadcast %cst_66 : f32 to vector<8x32xf32>
    %163 = arith.mulf %162, %161 : vector<8x32xf32>
    %164 = vector.extract_strided_slice %153 {offsets = [0, 64], sizes = [8, 32], strides = [1, 1]} : vector<8x128xf32> to vector<8x32xf32>
    %165 = vector.extract_strided_slice %153 {offsets = [0, 96], sizes = [8, 32], strides = [1, 1]} : vector<8x128xf32> to vector<8x32xf32>
    %cst_67 = arith.constant 1.000000e+00 : f32
    %166 = vector.broadcast %cst_67 : f32 to vector<8x32xf32>
    %167 = arith.addf %165, %166 : vector<8x32xf32>
    %cst_68 = arith.constant 5.000000e-01 : f32
    %168 = vector.broadcast %cst_68 : f32 to vector<8x32xf32>
    %169 = arith.mulf %168, %167 : vector<8x32xf32>
    %170 = arith.mulf %163, %144 : vector<8x32xf32>
    %171 = arith.mulf %158, %164 : vector<8x32xf32>
    %172 = arith.addf %170, %171 : vector<8x32xf32>
    %173 = math.tanh %172 : vector<8x32xf32>
    %174 = arith.mulf %169, %173 : vector<8x32xf32>
    %c0_69 = arith.constant 0 : index
    %c160 = arith.constant 160 : index
    %175 = vector.load %arg14[%c0_69, %c160] : memref<8x256xf32, #tpu.memory_space<vmem>>, vector<8x32xf32>
    tpu.vector_store %arg14[%c0_69, %c160], %174 {strides = array<i32>} : memref<8x256xf32, #tpu.memory_space<vmem>>, vector<8x32xf32>,
    %176 = vector.extract_strided_slice %5 {offsets = [48, 0], sizes = [8, 128], strides = [1, 1]} : vector<64x128xf32> to vector<8x128xf32>
    %177 = arith.truncf %174 : vector<8x32xf32> to vector<8x32xbf16>
    %c0_70 = arith.constant 0 : index
    %c0_71 = arith.constant 0 : index
    %178 = vector.load %arg4[%c0_70, %c0_71] : memref<32x128xbf16, #tpu.memory_space<vmem>>, vector<32x128xbf16>
    %cst_72 = arith.constant dense<0.000000e+00> : vector<8x128xf32>
    %179 = tpu.matmul %177, %178, %cst_72 {dimension_numbers = #tpu.dot_dimension_numbers<[1], [0], [0], [1], [0, 0, 1, 1], [], []>} : vector<8x32xbf16>, vector<32x128xbf16>, vector<8x128xf32> -> vector<8x128xf32>
    %180 = arith.addf %176, %179 : vector<8x128xf32>
    %181 = math.tanh %180 : vector<8x128xf32>
    %182 = vector.extract_strided_slice %181 {offsets = [0, 0], sizes = [8, 32], strides = [1, 1]} : vector<8x128xf32> to vector<8x32xf32>
    %cst_73 = arith.constant 1.000000e+00 : f32
    %183 = vector.broadcast %cst_73 : f32 to vector<8x32xf32>
    %184 = arith.addf %182, %183 : vector<8x32xf32>
    %cst_74 = arith.constant 5.000000e-01 : f32
    %185 = vector.broadcast %cst_74 : f32 to vector<8x32xf32>
    %186 = arith.mulf %185, %184 : vector<8x32xf32>
    %187 = vector.extract_strided_slice %181 {offsets = [0, 32], sizes = [8, 32], strides = [1, 1]} : vector<8x128xf32> to vector<8x32xf32>
    %cst_75 = arith.constant 1.000000e+00 : f32
    %188 = vector.broadcast %cst_75 : f32 to vector<8x32xf32>
    %189 = arith.addf %187, %188 : vector<8x32xf32>
    %cst_76 = arith.constant 5.000000e-01 : f32
    %190 = vector.broadcast %cst_76 : f32 to vector<8x32xf32>
    %191 = arith.mulf %190, %189 : vector<8x32xf32>
    %192 = vector.extract_strided_slice %181 {offsets = [0, 64], sizes = [8, 32], strides = [1, 1]} : vector<8x128xf32> to vector<8x32xf32>
    %193 = vector.extract_strided_slice %181 {offsets = [0, 96], sizes = [8, 32], strides = [1, 1]} : vector<8x128xf32> to vector<8x32xf32>
    %cst_77 = arith.constant 1.000000e+00 : f32
    %194 = vector.broadcast %cst_77 : f32 to vector<8x32xf32>
    %195 = arith.addf %193, %194 : vector<8x32xf32>
    %cst_78 = arith.constant 5.000000e-01 : f32
    %196 = vector.broadcast %cst_78 : f32 to vector<8x32xf32>
    %197 = arith.mulf %196, %195 : vector<8x32xf32>
    %198 = arith.mulf %191, %172 : vector<8x32xf32>
    %199 = arith.mulf %186, %192 : vector<8x32xf32>
    %200 = arith.addf %198, %199 : vector<8x32xf32>
    %201 = math.tanh %200 : vector<8x32xf32>
    %202 = arith.mulf %197, %201 : vector<8x32xf32>
    %c0_79 = arith.constant 0 : index
    %c192 = arith.constant 192 : index
    %203 = vector.load %arg14[%c0_79, %c192] : memref<8x256xf32, #tpu.memory_space<vmem>>, vector<8x32xf32>
    tpu.vector_store %arg14[%c0_79, %c192], %202 {strides = array<i32>} : memref<8x256xf32, #tpu.memory_space<vmem>>, vector<8x32xf32>,
    %204 = vector.extract_strided_slice %5 {offsets = [56, 0], sizes = [8, 128], strides = [1, 1]} : vector<64x128xf32> to vector<8x128xf32>
    %205 = arith.truncf %202 : vector<8x32xf32> to vector<8x32xbf16>
    %c0_80 = arith.constant 0 : index
    %c0_81 = arith.constant 0 : index
    %206 = vector.load %arg4[%c0_80, %c0_81] : memref<32x128xbf16, #tpu.memory_space<vmem>>, vector<32x128xbf16>
    %cst_82 = arith.constant dense<0.000000e+00> : vector<8x128xf32>
    %207 = tpu.matmul %205, %206, %cst_82 {dimension_numbers = #tpu.dot_dimension_numbers<[1], [0], [0], [1], [0, 0, 1, 1], [], []>} : vector<8x32xbf16>, vector<32x128xbf16>, vector<8x128xf32> -> vector<8x128xf32>
    %208 = arith.addf %204, %207 : vector<8x128xf32>
    %209 = math.tanh %208 : vector<8x128xf32>
    %210 = vector.extract_strided_slice %209 {offsets = [0, 0], sizes = [8, 32], strides = [1, 1]} : vector<8x128xf32> to vector<8x32xf32>
    %cst_83 = arith.constant 1.000000e+00 : f32
    %211 = vector.broadcast %cst_83 : f32 to vector<8x32xf32>
    %212 = arith.addf %210, %211 : vector<8x32xf32>
    %cst_84 = arith.constant 5.000000e-01 : f32
    %213 = vector.broadcast %cst_84 : f32 to vector<8x32xf32>
    %214 = arith.mulf %213, %212 : vector<8x32xf32>
    %215 = vector.extract_strided_slice %209 {offsets = [0, 32], sizes = [8, 32], strides = [1, 1]} : vector<8x128xf32> to vector<8x32xf32>
    %cst_85 = arith.constant 1.000000e+00 : f32
    %216 = vector.broadcast %cst_85 : f32 to vector<8x32xf32>
    %217 = arith.addf %215, %216 : vector<8x32xf32>
    %cst_86 = arith.constant 5.000000e-01 : f32
    %218 = vector.broadcast %cst_86 : f32 to vector<8x32xf32>
    %219 = arith.mulf %218, %217 : vector<8x32xf32>
    %220 = vector.extract_strided_slice %209 {offsets = [0, 64], sizes = [8, 32], strides = [1, 1]} : vector<8x128xf32> to vector<8x32xf32>
    %221 = vector.extract_strided_slice %209 {offsets = [0, 96], sizes = [8, 32], strides = [1, 1]} : vector<8x128xf32> to vector<8x32xf32>
    %cst_87 = arith.constant 1.000000e+00 : f32
    %222 = vector.broadcast %cst_87 : f32 to vector<8x32xf32>
    %223 = arith.addf %221, %222 : vector<8x32xf32>
    %cst_88 = arith.constant 5.000000e-01 : f32
    %224 = vector.broadcast %cst_88 : f32 to vector<8x32xf32>
    %225 = arith.mulf %224, %223 : vector<8x32xf32>
    %226 = arith.mulf %219, %200 : vector<8x32xf32>
    %227 = arith.mulf %214, %220 : vector<8x32xf32>
    %228 = arith.addf %226, %227 : vector<8x32xf32>
    %229 = math.tanh %228 : vector<8x32xf32>
    %230 = arith.mulf %225, %229 : vector<8x32xf32>
    %c0_89 = arith.constant 0 : index
    %c224 = arith.constant 224 : index
    %231 = vector.load %arg14[%c0_89, %c224] : memref<8x256xf32, #tpu.memory_space<vmem>>, vector<8x32xf32>
    tpu.vector_store %arg14[%c0_89, %c224], %230 {strides = array<i32>} : memref<8x256xf32, #tpu.memory_space<vmem>>, vector<8x32xf32>,
    %c0_90 = arith.constant 0 : index
    %c0_91 = arith.constant 0 : index
    %232 = vector.load %arg12[%c0_90, %c0_91] : memref<8x32xf32, #tpu.memory_space<vmem>>, vector<8x32xf32>
    tpu.vector_store %arg12[%c0_90, %c0_91], %230 {strides = array<i32>} : memref<8x32xf32, #tpu.memory_space<vmem>>, vector<8x32xf32>,
    %c0_92 = arith.constant 0 : index
    %c0_93 = arith.constant 0 : index
    %233 = vector.load %arg13[%c0_92, %c0_93] : memref<8x32xf32, #tpu.memory_space<vmem>>, vector<8x32xf32>
    tpu.vector_store %arg13[%c0_92, %c0_93], %228 {strides = array<i32>} : memref<8x32xf32, #tpu.memory_space<vmem>>, vector<8x32xf32>,
    %c0_94 = arith.constant 0 : index
    %c0_95 = arith.constant 0 : index
    %234 = vector.load %arg14[%c0_94, %c0_95] : memref<8x256xf32, #tpu.memory_space<vmem>>, vector<8x256xf32>
    %235 = arith.truncf %234 : vector<8x256xf32> to vector<8x256xbf16>
    %c0_96 = arith.constant 0 : index
    %c0_97 = arith.constant 0 : index
    %236 = vector.load %arg7[%c0_96, %c0_97] : memref<256x256xbf16, #tpu.memory_space<vmem>>, vector<256x256xbf16>
    %cst_98 = arith.constant dense<0.000000e+00> : vector<8x256xf32>
    %237 = tpu.matmul %235, %236, %cst_98 {dimension_numbers = #tpu.dot_dimension_numbers<[1], [0], [0], [1], [0, 0, 1, 1], [], []>} : vector<8x256xbf16>, vector<256x256xbf16>, vector<8x256xf32> -> vector<8x256xf32>
    %c0_99 = arith.constant 0 : index
    %c0_100 = arith.constant 0 : index
    %238 = vector.load %arg6[%c0_99, %c0_100] : memref<8x8xbf16, #tpu.memory_space<vmem>>, vector<8x8xbf16>
    %239 = arith.truncf %237 : vector<8x256xf32> to vector<8x256xbf16>
    %cst_101 = arith.constant dense<0.000000e+00> : vector<8x256xf32>
    %240 = tpu.matmul %238, %239, %cst_101 {dimension_numbers = #tpu.dot_dimension_numbers<[1], [0], [0], [1], [0, 0, 1, 1], [], []>} : vector<8x8xbf16>, vector<8x256xbf16>, vector<8x256xf32> -> vector<8x256xf32>
    %c0_102 = arith.constant 0 : index
    %c0_103 = arith.constant 0 : index
    %241 = vector.load %arg8[%c0_102, %c0_103] : memref<1x256xf32, #tpu.memory_space<vmem>>, vector<1x256xf32>
    %242 = vector.broadcast %241 : vector<1x256xf32> to vector<8x256xf32>
    %243 = arith.addf %240, %242 : vector<8x256xf32>
    %cst_104 = arith.constant 0.000000e+00 : f32
    %244 = vector.broadcast %cst_104 : f32 to vector<8x256xf32>
    %245 = arith.maximumf %243, %244 : vector<8x256xf32>
    %246 = arith.truncf %245 : vector<8x256xf32> to vector<8x256xbf16>
    %c0_105 = arith.constant 0 : index
    %c0_106 = arith.constant 0 : index
    %247 = vector.load %arg9[%c0_105, %c0_106] : memref<256x128xbf16, #tpu.memory_space<vmem>>, vector<256x128xbf16>
    %cst_107 = arith.constant dense<0.000000e+00> : vector<8x128xf32>
    %248 = tpu.matmul %246, %247, %cst_107 {dimension_numbers = #tpu.dot_dimension_numbers<[1], [0], [0], [1], [0, 0, 1, 1], [], []>} : vector<8x256xbf16>, vector<256x128xbf16>, vector<8x128xf32> -> vector<8x128xf32>
    %c0_108 = arith.constant 0 : index
    %c0_109 = arith.constant 0 : index
    %249 = vector.load %arg6[%c0_108, %c0_109] : memref<8x8xbf16, #tpu.memory_space<vmem>>, vector<8x8xbf16>
    %250 = arith.truncf %248 : vector<8x128xf32> to vector<8x128xbf16>
    %cst_110 = arith.constant dense<0.000000e+00> : vector<8x128xf32>
    %251 = tpu.matmul %249, %250, %cst_110 {dimension_numbers = #tpu.dot_dimension_numbers<[1], [0], [0], [1], [0, 0, 1, 1], [], []>} : vector<8x8xbf16>, vector<8x128xbf16>, vector<8x128xf32> -> vector<8x128xf32>
    %c0_111 = arith.constant 0 : index
    %c0_112 = arith.constant 0 : index
    %252 = vector.load %arg10[%c0_111, %c0_112] : memref<1x128xf32, #tpu.memory_space<vmem>>, vector<1x128xf32>
    %253 = vector.broadcast %252 : vector<1x128xf32> to vector<8x128xf32>
    %254 = arith.addf %251, %253 : vector<8x128xf32>
    %c0_113 = arith.constant 0 : index
    %c0_114 = arith.constant 0 : index
    %255 = vector.load %arg11[%c0_113, %c0_114] : memref<8x128xf32, #tpu.memory_space<vmem>>, vector<8x128xf32>
    tpu.vector_store %arg11[%c0_113, %c0_114], %254 {strides = array<i32>} : memref<8x128xf32, #tpu.memory_space<vmem>>, vector<8x128xf32>,
    return
  }
}

</mosaic_0001>

<bundles_post_ra>
// kernel: inundation_block_forward.1
= control target key start
LH: loop header
LB: loop body
LE: loop exit
PB: predicated region body
PF: predicated region fallthrough
CT: control target
= control target key end

     0   :  { %19 = vsyncpa [#allocation4], 0  ;;  %vm93_vm0 = vcmask 1041408   ;;  %vm80_vm1 = vcmask 31744   ;;  %v1837_v4 = vmov 0.0   ;;  %vm1838_vm2 = vmmov 0   ;;  %s2330_s0 = inlined_call_operand.vmem [shape: bf16[64,4], index: 0, kind: input, shape index: {}]   ;;  %s2331_s1 = inlined_call_operand.vmem [shape: f32[8,32], index: 1, kind: input, shape index: {}, may-alias: {1,2}]   ;;  %s2332_s2 = inlined_call_operand.vmem [shape: f32[8,32], index: 2, kind: input, shape index: {}, may-alias: {1,2}]   ;;  %s2333_s3 = inlined_call_operand.vmem [shape: bf16[4,128], index: 3, kind: input, shape index: {}]   ;;  %s2334_s4 = inlined_call_operand.vmem [shape: bf16[32,128], index: 4, kind: input, shape index: {}]   ;;  %s2335_s5 = inlined_call_operand.vmem [shape: f32[1,128], index: 5, kind: input, shape index: {}]   ;;  %s2336_s6 = inlined_call_operand.vmem [shape: bf16[8,8], index: 6, kind: input, shape index: {}]   ;;  %s2337_s7 = inlined_call_operand.vmem [shape: bf16[256,256], index: 7, kind: input, shape index: {}]   ;;  %s2338_s8 = inlined_call_operand.vmem [shape: f32[1,256], index: 8, kind: input, shape index: {}]   ;;  %s2339_s9 = inlined_call_operand.vmem [shape: bf16[256,128], index: 9, kind: input, shape index: {}]   ;;  %s2340_s10 = inlined_call_operand.vmem [shape: f32[1,128], index: 10, kind: input, shape index: {}]   ;;  %s2341_s11 = inlined_call_operand.vmem [shape: f32[8,128], index: 11, kind: output, shape index: {0}]   ;;  %s2342_s12 = inlined_call_operand.hbm [shape: f32[8,32], index: 12, kind: output, shape index: {1}]   ;;  %s2343_s13 = inlined_call_operand.hbm [shape: f32[8,32], index: 13, kind: output, shape index: {2}]  }
   0x1   :  { %v52_v0 = vld [vmem:[%s2333_s3] sm:$0x3]  ;;  %v1673_v1 = vld [vmem:[%s2330_s0 + $0x10] sm:$0xff]   ;;  %v1674_v3 = vld [vmem:[%s2330_s0 + $0x18] sm:$0xff]   ;;  %vm181_vm3 = vcmask 261120  }
   0x2   :  { %1664 = vmatprep.subr.msk.bf16.mxu1 %vm93_vm0, %v52_v0  ;;  %v95_v2 = vsel %vm93_vm0, %v52_v0, 0  ;;  %1663 = vmatprep.subr.msk.bf16.mxu0 %vm93_vm0, %v52_v0  ;;  %v1675_v5 = vld [vmem:[%s2330_s0] sm:$0xff]   ;;  %v1677_v7 = vld [vmem:[%s2330_s0 + $0x8] sm:$0xff]  }
   0x3   :  { %1662 = vmatpush3.bf16.msra.mxu1 %v95_v2  ;;  %1582 = vmatpush3.bf16.msra.mxu0 %v95_v2  ;;  %v1676_v6 = vld [vmem:[%s2334_s4] sm:$0xff]   ;;  %v1678_v8 = vld [vmem:[%s2334_s4 + $0x8] sm:$0xff]  }
   0x4   :  { %1587 = vmatprep.mubr.msk.bf16.mxu1 %vm80_vm1, %v1673_v1  ;;  %1591 = vmatprep.subr.bf16.mxu1 %v1837_v4  ;;  %v162_v9 = vld [vmem:[%s2331_s1] sm:$0xff] }
   0x5   :  { %1607 = vmatprep.subr.bf16.mxu0 %v1837_v4  ;;  %1583 = vmatprep.mubr.msk.bf16.mxu0 %vm80_vm1, %v1675_v5  ;;  %v164_v10 = vpack.c.bf16 %v162_v9, %v162_v9 }
   0x6   :  { %1588 = vmatmul.mubr.msk.bf16.vlgmr.msra.gmra.mrb[0].mxu1 %vm80_vm1, %v1674_v3  ;;  %1584 = vmatmul.mubr.msk.bf16.vlgmr.msra.gmra.mrb[0].mxu0 %vm80_vm1, %v1677_v7 }
   0x7   :  { %1592 = vmatpush3.bf16.msra.mxu1 %v1676_v6  ;;  %1595 = vmatprep.mubr.msk.bf16.mxu1 %vm1838_vm2, %v1837_v4 }
   0x8   :  { %1593 = vmatprep.subr.bf16.mxu1 %v1837_v4  ;;  %1611 = vmatprep.mubr.msk.bf16.mxu0 %vm1838_vm2, %v1837_v4 }
   0xb   :  { %1594 = vmatpush3.bf16.msra.mxu1 %v1678_v8 }
   0xc   :  { %1599 = vmatprep.subr.bf16.mxu1 %v1837_v4 }
   0xe   :  { %1596 = vmatmul.mubr.msk.bf16.vlgmr.msra.gmra.mrb[4].mxu1 %vm181_vm3, %v164_v10 }
   0xf   :  { %1603 = vmatprep.mubr.msk.bf16.mxu1 %vm1838_vm2, %v1837_v4 }
  0x10   :  { %20 = vsyncpa [#allocation6], 0  ;;  %v1443_v11 = vld [vmem:[%s2335_s5] ss:$0 sm:$0xff]  ;;  %s1839_s5 = smov 64   ;;  %s1840_s25 = smov 32  }
  0x11   :  { %v163_v34 = vld [vmem:[%s2332_s2] sm:$0xff]  ;;  %v1680_v44 = vld [vmem:[%s2334_s4 + $0x8] sm:$0xff]   ;;  %vm343_vm4 = vcmask 523520   ;;  %vm433_vm5 = vcmask 785920   ;;  %vm519_vm6 = vcmask 1048320   ;;  %vm1139_vm7 = vcmask 1043456  }
  0x12   :  { %v1679_v43 = vld [vmem:[%s2334_s4] sm:$0xff]   ;;  %v1682_v0 = vld [vmem:[%s2334_s4 + $0x8] sm:$0xff]   ;;  %vm1135_vm8 = vcmask 64512   ;;  %s1844_s23 = smov [#allocation5]  }
  0x13   :  { %1600 = vmatpush3.bf16.msra.mxu1 %v1679_v43  ;;  %v1681_v63 = vld [vmem:[%s2334_s4] sm:$0xff]   ;;  %s1429_s24 = sshll.u32 %s1844_s23, 4  ;;  %s1430_s24 = int_to_ptr.vmem [resolvable:$true] %s1429_s24 }
  0x14   :  { %1601 = vmatprep.subr.bf16.mxu1 %v1837_v4  ;;  %1608 = vmatpush3.bf16.msra.mxu0 %v1681_v63 }
  0x15   :  { %1609 = vmatprep.subr.bf16.mxu0 %v1837_v4 }
  0x17   :  { %1602 = vmatpush3.bf16.msra.mxu1 %v1680_v44 }
  0x18   :  { %1615 = vmatprep.subr.bf16.mxu1 %v1837_v4  ;;  %1610 = vmatpush3.bf16.msra.mxu0 %v1682_v0 }
  0x19   :  { %1623 = vmatprep.subr.bf16.mxu0 %v1837_v4 }
  0xd9   :  { %v1589_v12 = vpop.f32.mrb[0].mxu1  ;;  %v1585_v16 = vpop.f32.mrb[0].mxu0 }
  0xda   :  { %v1957_v13 = vadd.f32 %v1589_v12, %v1443_v11  ;;  %v147_v14 = vpop.f32.mrb[1].mxu1  ;;  %v1961_v18 = vadd.f32 %v1585_v16, %v1443_v11  ;;  %v131_v20 = vpop.f32.mrb[1].mxu0 }
  0xdb   :  { %v1959_v15 = vadd.f32 %v1443_v11, %v147_v14  ;;  %v1590_v17 = vpop.f32.mrb[2].mxu1  ;;  %v1586_v23 = vpop.f32.mrb[2].mxu0  ;;  %v132_v24 = vadd.f32 %v1443_v11, %v131_v20 }
  0xdc   :  { %v1963_v19 = vadd.f32 %v1590_v17, %v1443_v11  ;;  %v150_v21 = vpop.f32.mrb[3].mxu1  ;;  %v1967_v25 = vadd.f32 %v1586_v23, %v1443_v11  ;;  %v134_v26 = vpop.f32.mrb[3].mxu0 }
  0xdd   :  { %v1965_v22 = vadd.f32 %v1443_v11, %v150_v21  ;;  %v135_v27 = vadd.f32 %v1443_v11, %v134_v26  ;;  %v1684_v26 = vld [vmem:[%s2334_s4 + $0x8] sm:$0xff]  }
  0xe1   :  { %v219_v28 = vpop.f32.mrb[4].mxu1 }
  0xe2   :  { %v225_v29 = vadd.f32 %v219_v28, %v132_v24  ;;  %v1597_v30 = vpop.f32.mrb[5].mxu1 }
  0xe3   :  { %v222_v31 = vpop.f32.mrb[6].mxu1 }
  0xe4   :  { %1757 = vtanh.f32 %v225_v29  ;;  %v1598_v32 = vpop.f32.mrb[7].mxu1 }
  0xee   :  { %v1758_v33 = vpop.eup %1757 }
  0xef   :  { %235 = vrot.lane.b32.xlu0 %v1758_v33, %s1839_s5  ;;  %v227_v35 = vadd.f32 1.0, %v1758_v33 }
  0xf1   :  { %v228_v36 = vmul.f32 0.5, %v227_v35 }
  0xf3   :  { %230 = vrot.lane.b32.xlu0 %v163_v34, %s1840_s25 }
 0x161   :  { %v236_v37 = vpop.permute.xlu0 %235 }
 0x162   :  { %v238_v38 = vmul.f32 %v236_v37, %v228_v36 }
 0x164   :  { %240 = vrot.lane.b32.xlu1 %v238_v38, %s1840_s25 }
 0x165   :  { %v231_v39 = vpop.permute.xlu0 %230 }
 0x166   :  { %v233_v40 = vmul.f32 %v231_v39, %v228_v36 }
 0x1d6   :  { %v241_v41 = vpop.permute.xlu1 %240 }
 0x1d7   :  { %v243_v42 = vadd.f32 %v241_v41, %v233_v40 }
 0x1d9   :  { %1759 = vtanh.f32 %v243_v42 }
 0x1e3   :  { %v1760_v45 = vpop.eup %1759 }
 0x1e4   :  { %246 = vrot.lane.b32.xlu1 %v1760_v45, %s1839_s5  ;;  %v1686_v45 = vld [vmem:[%s2334_s4 + $0x8] sm:$0xff]  }
 0x256   :  { %v247_v46 = vpop.permute.xlu1 %246 }
 0x257   :  { %v1984_v47 = vmul.f32 %v247_v46, %v228_v36 }
 0x259   :  { %v255_v48 = vpack.c.bf16 %v1984_v47, %v1984_v47 }
 0x25b   :  { %261 = vrot.lane.b32.xlu0 %v255_v48, %s1840_s25 }
 0x2cd   :  { %v262_v49 = vpop.permute.xlu0 %261 }
 0x2ce   :  { %1604 = vmatmul.mubr.msk.bf16.vlgmr.msra.gmra.mrb[8].mxu1 %vm181_vm3, %v262_v49 }
 0x2cf   :  { %1619 = vmatprep.mubr.msk.bf16.mxu1 %vm1838_vm2, %v1837_v4 }
 0x3a1   :  { %v312_v50 = vpop.f32.mrb[8].mxu1 }
 0x3a2   :  { %v318_v51 = vadd.f32 %v312_v50, %v135_v27  ;;  %v1605_v52 = vpop.f32.mrb[9].mxu1 }
 0x3a3   :  { %v315_v53 = vpop.f32.mrb[10].mxu1 }
 0x3a4   :  { %1761 = vtanh.f32 %v318_v51  ;;  %v1606_v54 = vpop.f32.mrb[11].mxu1 }
 0x3ae   :  { %v1762_v55 = vpop.eup %1761 }
 0x3af   :  { %324 = vrot.lane.b32.xlu1 %v1762_v55, %s1839_s5  ;;  %v320_v56 = vadd.f32 1.0, %v1762_v55 }
 0x3b1   :  { %v321_v57 = vmul.f32 0.5, %v320_v56 }
 0x3b3   :  { %v322_v60 = vmul.f32 %v321_v57, %v243_v42 }
 0x421   :  { %v325_v58 = vpop.permute.xlu1 %324 }
 0x422   :  { %v327_v59 = vmul.f32 %v325_v58, %v321_v57 }
 0x424   :  { %329 = vrot.lane.b32.xlu0 %v327_v59, %s1840_s25 }
 0x496   :  { %v330_v61 = vpop.permute.xlu0 %329 }
 0x497   :  { %v332_v62 = vadd.f32 %v330_v61, %v322_v60 }
 0x499   :  { %1763 = vtanh.f32 %v332_v62 }
 0x4a3   :  { %v1764_v1 = vpop.eup %1763 }
 0x4a4   :  { %335 = vrot.lane.b32.xlu1 %v1764_v1, %s1839_s5  ;;  %v1688_v1 = vld [vmem:[%s2334_s4 + $0x8] sm:$0xff]  }
 0x516   :  { %v336_v2 = vpop.permute.xlu1 %335 }
 0x517   :  { %v2003_v3 = vmul.f32 %v336_v2, %v321_v57 }
 0x519   :  { %v345_v5 = vpack.c.bf16 %v2003_v3, %v2003_v3 }
 0x51b   :  { %351 = vrot.lane.b32.xlu0 %v345_v5, %s1840_s25 }
 0x58d   :  { %v352_v6 = vpop.permute.xlu0 %351 }
 0x58e   :  { %1612 = vmatmul.mubr.msk.bf16.vlgmr.msra.gmra.mrb[4].mxu0 %vm181_vm3, %v352_v6 }
 0x58f   :  { %1627 = vmatprep.mubr.msk.bf16.mxu0 %vm1838_vm2, %v1837_v4 }
 0x661   :  { %v402_v7 = vpop.f32.mrb[4].mxu0 }
 0x662   :  { %v408_v8 = vadd.f32 %v402_v7, %v1961_v18  ;;  %v1613_v9 = vpop.f32.mrb[5].mxu0  ;;  %v1683_v18 = vld [vmem:[%s2334_s4] sm:$0xff]  }
 0x663   :  { %v405_v10 = vpop.f32.mrb[6].mxu0  ;;  %1616 = vmatpush3.bf16.msra.mxu1 %v1683_v18 }
 0x664   :  { %1765 = vtanh.f32 %v408_v8  ;;  %v1614_v11 = vpop.f32.mrb[7].mxu0  ;;  %1617 = vmatprep.subr.bf16.mxu1 %v1837_v4 }
 0x667   :  { %1618 = vmatpush3.bf16.msra.mxu1 %v1684_v26 }
 0x668   :  { %1631 = vmatprep.subr.bf16.mxu1 %v1837_v4 }
 0x66e   :  { %v1766_v12 = vpop.eup %1765 }
 0x66f   :  { %414 = vrot.lane.b32.xlu1 %v1766_v12, %s1839_s5  ;;  %v410_v14 = vadd.f32 1.0, %v1766_v12 }
 0x671   :  { %v411_v16 = vmul.f32 0.5, %v410_v14 }
 0x673   :  { %v412_v21 = vmul.f32 %v411_v16, %v332_v62 }
 0x6e1   :  { %v415_v17 = vpop.permute.xlu1 %414 }
 0x6e2   :  { %v417_v20 = vmul.f32 %v415_v17, %v411_v16 }
 0x6e4   :  { %419 = vrot.lane.b32.xlu0 %v417_v20, %s1840_s25 }
 0x756   :  { %v420_v23 = vpop.permute.xlu0 %419 }
 0x757   :  { %v422_v24 = vadd.f32 %v420_v23, %v412_v21 }
 0x759   :  { %1767 = vtanh.f32 %v422_v24 }
 0x763   :  { %v1768_v27 = vpop.eup %1767 }
 0x764   :  { %425 = vrot.lane.b32.xlu1 %v1768_v27, %s1839_s5  ;;  %v1690_v27 = vld [vmem:[%s2334_s4 + $0x8] sm:$0xff]  }
 0x7d6   :  { %v426_v28 = vpop.permute.xlu1 %425 }
 0x7d7   :  { %v2023_v29 = vmul.f32 %v426_v28, %v411_v16 }
 0x7d9   :  { %v435_v30 = vpack.c.bf16 %v2023_v29, %v2023_v29 }
 0x7db   :  { %441 = vrot.lane.b32.xlu0 %v435_v30, %s1840_s25 }
 0x84d   :  { %v442_v31 = vpop.permute.xlu0 %441 }
 0x84e   :  { %1620 = vmatmul.mubr.msk.bf16.vlgmr.msra.gmra.mrb[12].mxu1 %vm181_vm3, %v442_v31 }
 0x84f   :  { %1635 = vmatprep.mubr.msk.bf16.mxu1 %vm1838_vm2, %v1837_v4 }
 0x921   :  { %v492_v32 = vpop.f32.mrb[12].mxu1 }
 0x922   :  { %v498_v33 = vadd.f32 %v492_v32, %v1967_v25  ;;  %v1621_v34 = vpop.f32.mrb[13].mxu1  ;;  %v1685_v25 = vld [vmem:[%s2334_s4] sm:$0xff]  }
 0x923   :  { %v495_v35 = vpop.f32.mrb[14].mxu1  ;;  %1624 = vmatpush3.bf16.msra.mxu0 %v1685_v25 }
 0x924   :  { %1769 = vtanh.f32 %v498_v33  ;;  %v1622_v36 = vpop.f32.mrb[15].mxu1  ;;  %1625 = vmatprep.subr.bf16.mxu0 %v1837_v4 }
 0x927   :  { %1626 = vmatpush3.bf16.msra.mxu0 %v1686_v45 }
 0x928   :  { %1639 = vmatprep.subr.bf16.mxu0 %v1837_v4 }
 0x92e   :  { %v1770_v37 = vpop.eup %1769 }
 0x92f   :  { %504 = vrot.lane.b32.xlu1 %v1770_v37, %s1839_s5  ;;  %v500_v38 = vadd.f32 1.0, %v1770_v37 }
 0x931   :  { %v501_v39 = vmul.f32 0.5, %v500_v38 }
 0x933   :  { %v502_v42 = vmul.f32 %v501_v39, %v422_v24 }
 0x9a1   :  { %v505_v40 = vpop.permute.xlu1 %504 }
 0x9a2   :  { %v507_v41 = vmul.f32 %v505_v40, %v501_v39 }
 0x9a4   :  { %509 = vrot.lane.b32.xlu0 %v507_v41, %s1840_s25 }
 0xa16   :  { %v510_v43 = vpop.permute.xlu0 %509 }
 0xa17   :  { %v512_v44 = vadd.f32 %v510_v43, %v502_v42 }
 0xa19   :  { %1771 = vtanh.f32 %v512_v44 }
 0xa23   :  { %v1772_v46 = vpop.eup %1771 }
 0xa24   :  { %515 = vrot.lane.b32.xlu1 %v1772_v46, %s1839_s5  ;;  %v1692_v46 = vld [vmem:[%s2334_s4 + $0x8] sm:$0xff]  }
 0xa96   :  { %v516_v48 = vpop.permute.xlu1 %515 }
 0xa97   :  { %v2043_v49 = vmul.f32 %v516_v48, %v501_v39 }
 0xa99   :  { %v521_v50 = vpack.c.bf16 %v2043_v49, %v2043_v49 }
 0xa9b   :  { %527 = vrot.lane.b32.xlu0 %v521_v50, %s1840_s25 }
 0xb0d   :  { %v528_v51 = vpop.permute.xlu0 %527 }
 0xb0e   :  { %1628 = vmatmul.mubr.msk.bf16.vlgmr.msra.gmra.mrb[8].mxu0 %vm181_vm3, %v528_v51 }
 0xb0f   :  { %1643 = vmatprep.mubr.msk.bf16.mxu0 %vm1838_vm2, %v1837_v4 }
 0xbe1   :  { %v578_v52 = vpop.f32.mrb[8].mxu0 }
 0xbe2   :  { %v584_v53 = vadd.f32 %v578_v52, %v1959_v15  ;;  %v1629_v54 = vpop.f32.mrb[9].mxu0  ;;  %v1687_v15 = vld [vmem:[%s2334_s4] sm:$0xff]  }
 0xbe3   :  { %v581_v55 = vpop.f32.mrb[10].mxu0  ;;  %1632 = vmatpush3.bf16.msra.mxu1 %v1687_v15  ;;  %v1698_v15 = vld [vmem:[%s2337_s7 + $0x14] ss:$8 sps:$4 sm:$0xff]  }
 0xbe4   :  { %1773 = vtanh.f32 %v584_v53  ;;  %v1630_v56 = vpop.f32.mrb[11].mxu0  ;;  %1633 = vmatprep.subr.bf16.mxu1 %v1837_v4 }
 0xbe7   :  { %1634 = vmatpush3.bf16.msra.mxu1 %v1688_v1  ;;  %v1701_v1 = vld [vmem:[%s2337_s7 + $0x24] ss:$8 sps:$4 sm:$0xff]  }
 0xbe8   :  { %1647 = vmatprep.subr.bf16.mxu1 %v1837_v4 }
 0xbee   :  { %v1774_v57 = vpop.eup %1773 }
 0xbef   :  { %590 = vrot.lane.b32.xlu1 %v1774_v57, %s1839_s5  ;;  %v586_v58 = vadd.f32 1.0, %v1774_v57 }
 0xbf1   :  { %v587_v59 = vmul.f32 0.5, %v586_v58 }
 0xbf3   :  { %v588_v62 = vmul.f32 %v587_v59, %v512_v44 }
 0xc61   :  { %v591_v60 = vpop.permute.xlu1 %590 }
 0xc62   :  { %v593_v61 = vmul.f32 %v591_v60, %v587_v59 }
 0xc64   :  { %595 = vrot.lane.b32.xlu0 %v593_v61, %s1840_s25 }
 0xcd6   :  { %v596_v63 = vpop.permute.xlu0 %595 }
 0xcd7   :  { %v598_v0 = vadd.f32 %v596_v63, %v588_v62 }
 0xcd9   :  { %1775 = vtanh.f32 %v598_v0 }
 0xce3   :  { %v1776_v2 = vpop.eup %1775 }
 0xce4   :  { %601 = vrot.lane.b32.xlu1 %v1776_v2, %s1839_s5  ;;  %v1699_v2 = vld [vmem:[%s2337_s7 + $0x20] ss:$8 sps:$4 sm:$0xff]  }
 0xd56   :  { %v602_v5 = vpop.permute.xlu1 %601 }
 0xd57   :  { %v2063_v6 = vmul.f32 %v602_v5, %v587_v59  ;;  %v1704_v5 = vld [vmem:[%s2337_s7 + $0x34] ss:$8 sps:$4 sm:$0xff]  }
 0xd59   :  { %v610_v7 = vpack.c.bf16 %v2063_v6, %v2063_v6 }
 0xd5b   :  { %616 = vrot.lane.b32.xlu0 %v610_v7, %s1840_s25  ;;  %v1707_v7 = vld [vmem:[%s2337_s7 + $0x44] ss:$8 sps:$4 sm:$0xff]  }
 0xdcd   :  { %v617_v8 = vpop.permute.xlu0 %616 }
 0xdce   :  { %1636 = vmatmul.mubr.msk.bf16.vlgmr.msra.gmra.mrb[16].mxu1 %vm181_vm3, %v617_v8  ;;  %v1705_v8 = vld [vmem:[%s2337_s7 + $0x40] ss:$8 sps:$4 sm:$0xff]  }
 0xdcf   :  { %1651 = vmatprep.mubr.msk.bf16.mxu1 %vm1838_vm2, %v1837_v4 }
 0xea1   :  { %v667_v9 = vpop.f32.mrb[16].mxu1 }
 0xea2   :  { %v673_v10 = vadd.f32 %v667_v9, %v1965_v22  ;;  %v1637_v11 = vpop.f32.mrb[17].mxu1  ;;  %v1689_v22 = vld [vmem:[%s2334_s4] sm:$0xff]   ;;  %v1710_v9 = vld [vmem:[%s2337_s7 + $0x54] ss:$8 sps:$4 sm:$0xff]  }
 0xea3   :  { %v670_v12 = vpop.f32.mrb[18].mxu1  ;;  %1640 = vmatpush3.bf16.msra.mxu0 %v1689_v22  ;;  %v1713_v11 = vld [vmem:[%s2337_s7 + $0x64] ss:$8 sps:$4 sm:$0xff]   ;;  %v1726_v22 = vld [vmem:[%s2337_s7 + $0xb0] ss:$8 sps:$4 sm:$0xff]  }
 0xea4   :  { %1777 = vtanh.f32 %v673_v10  ;;  %v1638_v14 = vpop.f32.mrb[19].mxu1  ;;  %1641 = vmatprep.subr.bf16.mxu0 %v1837_v4  ;;  %v1708_v10 = vld [vmem:[%s2337_s7 + $0x50] ss:$8 sps:$4 sm:$0xff]   ;;  %v1711_v12 = vld [vmem:[%s2337_s7 + $0x60] ss:$8 sps:$4 sm:$0xff]  }
 0xea5   :  { %v1716_v14 = vld [vmem:[%s2337_s7 + $0x74] ss:$8 sps:$4 sm:$0xff]  }
 0xea7   :  { %1642 = vmatpush3.bf16.msra.mxu0 %v1690_v27 }
 0xeae   :  { %v1778_v16 = vpop.eup %1777 }
 0xeaf   :  { %679 = vrot.lane.b32.xlu1 %v1778_v16, %s1839_s5  ;;  %v675_v17 = vadd.f32 1.0, %v1778_v16  ;;  %v1714_v16 = vld [vmem:[%s2337_s7 + $0x70] ss:$8 sps:$4 sm:$0xff]  }
 0xeb1   :  { %v676_v20 = vmul.f32 0.5, %v675_v17  ;;  %v1719_v17 = vld [vmem:[%s2337_s7 + $0x84] ss:$8 sps:$4 sm:$0xff]  }
 0xeb3   :  { %v677_v24 = vmul.f32 %v676_v20, %v598_v0 }
 0xf21   :  { %v680_v21 = vpop.permute.xlu1 %679 }
 0xf22   :  { %v682_v23 = vmul.f32 %v680_v21, %v676_v20  ;;  %v1722_v21 = vld [vmem:[%s2337_s7 + $0x94] ss:$8 sps:$4 sm:$0xff]  }
 0xf24   :  { %684 = vrot.lane.b32.xlu0 %v682_v23, %s1840_s25  ;;  %v1720_v23 = vld [vmem:[%s2337_s7 + $0x90] ss:$8 sps:$4 sm:$0xff]  }
 0xf96   :  { %v685_v18 = vpop.permute.xlu0 %684 }
 0xf97   :  { %v687_v26 = vadd.f32 %v685_v18, %v677_v24  ;;  %v1723_v24 = vld [vmem:[%s2337_s7 + $0xa0] ss:$8 sps:$4 sm:$0xff]   ;;  %v1725_v18 = vld [vmem:[%s2337_s7 + $0xa4] ss:$8 sps:$4 sm:$0xff]  }
 0xf99   :  { %1779 = vtanh.f32 %v687_v26 }
 0xfa3   :  { %v1780_v28 = vpop.eup %1779 }
 0xfa4   :  { %690 = vrot.lane.b32.xlu1 %v1780_v28, %s1839_s5  ;;  %v1731_v28 = vld [vmem:[%s2337_s7 + $0xc4] ss:$8 sps:$4 sm:$0xff]  }
0x1016   :  { %v691_v30 = vpop.permute.xlu1 %690 }
0x1017   :  { %v693_v31 = vmul.f32 %v691_v30, %v676_v20  ;;  %v1717_v20 = vld [vmem:[%s2337_s7 + $0x80] ss:$8 sps:$4 sm:$0xff]  }
0x1019   :  { %v699_v32 = vpack.c.bf16 %v693_v31, %v693_v31 }
0x101b   :  { %705 = vrot.lane.b32.xlu0 %v699_v32, %s1840_s25  ;;  %v1729_v32 = vld [vmem:[%s2337_s7 + $0xc0] ss:$8 sps:$4 sm:$0xff]  }
0x108d   :  { %v706_v33 = vpop.permute.xlu0 %705 }
0x108e   :  { %1644 = vmatmul.mubr.msk.bf16.vlgmr.msra.gmra.mrb[12].mxu0 %vm181_vm3, %v706_v33 }
0x1161   :  { %v756_v34 = vpop.f32.mrb[12].mxu0 }
0x1162   :  { %v762_v35 = vadd.f32 %v756_v34, %v1957_v13  ;;  %v1645_v36 = vpop.f32.mrb[13].mxu0  ;;  %v1691_v13 = vld [vmem:[%s2334_s4] sm:$0xff]   ;;  %s1841_s4 = smov 96   ;;  %v1734_v34 = vld [vmem:[%s2337_s7 + $0xd4] ss:$8 sps:$4 sm:$0xff]  }
0x1163   :  { %v759_v37 = vpop.f32.mrb[14].mxu0  ;;  %1648 = vmatpush3.bf16.msra.mxu1 %v1691_v13  ;;  %v1732_v36 = vld [vmem:[%s2337_s7 + $0xd0] ss:$8 sps:$4 sm:$0xff]  }
0x1164   :  { %1781 = vtanh.f32 %v762_v35  ;;  %v1646_v38 = vpop.f32.mrb[15].mxu0  ;;  %1649 = vmatprep.subr.bf16.mxu1 %v1837_v4 }
0x1165   :  { %v1735_v38 = vld [vmem:[%s2337_s7 + $0xe0] ss:$8 sps:$4 sm:$0xff]  }
0x1167   :  { %1650 = vmatpush3.bf16.msra.mxu1 %v1692_v46 }
0x116e   :  { %v1782_v39 = vpop.eup %1781 }
0x116f   :  { %768 = vrot.lane.b32.xlu1 %v1782_v39, %s1839_s5  ;;  %v764_v40 = vadd.f32 1.0, %v1782_v39  ;;  %v1737_v39 = vld [vmem:[%s2337_s7 + $0xe4] ss:$8 sps:$4 sm:$0xff]  }
0x1171   :  { %v765_v41 = vmul.f32 0.5, %v764_v40  ;;  %v1740_v40 = vld [vmem:[%s2337_s7 + $0xf4] ss:$8 sps:$4 sm:$0xff]  }
0x1173   :  { %v766_v44 = vmul.f32 %v765_v41, %v687_v26  ;;  %v1728_v26 = vld [vmem:[%s2337_s7 + $0xb4] ss:$8 sps:$4 sm:$0xff]  }
0x11e1   :  { %v769_v42 = vpop.permute.xlu1 %768 }
0x11e2   :  { %v771_v43 = vmul.f32 %v769_v42, %v765_v41 }
0x11e4   :  { %773 = vrot.lane.b32.xlu0 %v771_v43, %s1840_s25 }
0x1256   :  { %v774_v25 = vpop.permute.xlu0 %773 }
0x1257   :  { %v2087_v45 = vadd.f32 %v774_v25, %v766_v44 }
0x1259   :  { %1783 = vtanh.f32 %v2087_v45 }
0x1263   :  { %v1784_v48 = vpop.eup %1783 }
0x1264   :  { %779 = vrot.lane.b32.xlu1 %v1784_v48, %s1839_s5 }
0x12d6   :  { %v780_v50 = vpop.permute.xlu1 %779 }
0x12d7   :  { %v2098_v51 = vmul.f32 %v780_v50, %v765_v41  ;;  %v1738_v41 = vld [vmem:[%s2337_s7 + $0xf0] ss:$8 sps:$4 sm:$0xff]   ;;  %v1842_v50 = vmov 0  }
0x12d9   :  { %v788_v52 = vpack.c.bf16 %v2098_v51, %v2098_v51 }
0x12db   :  { %794 = vrot.lane.b32.xlu0 %v788_v52, %s1840_s25 }
0x134d   :  { %v795_v53 = vpop.permute.xlu0 %794 }
0x134e   :  { %1652 = vmatmul.mubr.msk.bf16.vlgmr.msra.gmra.mrb[20].mxu1 %vm181_vm3, %v795_v53 }
0x134f   :  { %1178 = vmatprep.mubr.bf16.mxu1 %v1842_v50 }
0x1421   :  { %v845_v54 = vpop.f32.mrb[20].mxu1 }
0x1422   :  { %v851_v55 = vadd.f32 %v845_v54, %v1963_v19  ;;  %v1653_v56 = vpop.f32.mrb[21].mxu1 }
0x1423   :  { %v848_v57 = vpop.f32.mrb[22].mxu1 }
0x1424   :  { %1785 = vtanh.f32 %v851_v55  ;;  %v1654_v58 = vpop.f32.mrb[23].mxu1  ;;  %v1741_v57 = vld [vmem:[%s2339_s9 + $0x40] sm:$0xff]  }
0x142e   :  { %v1786_v59 = vpop.eup %1785 }
0x142f   :  { %857 = vrot.lane.b32.xlu1 %v1786_v59, %s1839_s5  ;;  %v853_v19 = vadd.f32 1.0, %v1786_v59 }
0x1431   :  { %v2113_v60 = vmul.f32 0.5, %v853_v19  ;;  %v2242_v19 = vld [vmem:[%s2336_s6] sm:$0xf] }
0x1433   :  { %606 = vrot.lane.b32.xlu1 %v2063_v6, %s1840_s25  ;;  %v1702_v6 = vld [vmem:[%s2337_s7 + $0x30] ss:$8 sps:$4 sm:$0xff]   ;;  %v855_v27 = vmul.f32 %v2113_v60, %v2087_v45 }
0x1437   :  { %695 = vrot.lane.b32.xlu1 %v693_v31, %s1839_s5 }
0x143b   :  { %340 = vrot.lane.b32.xlu1 %v2003_v3, %s1839_s5  ;;  %v1693_v3 = vld [vmem:[%s2337_s7] ss:$8 sps:$4 sm:$0xff]  }
0x143f   :  { %430 = vrot.lane.b32.xlu1 %v2023_v29, %s1841_s4  ;;  %v1695_v29 = vld [vmem:[%s2337_s7 + $0x4] ss:$8 sps:$4 sm:$0xff]  }
0x1440   :  { %1079 = vmatprep.subr.bf16.mxu0 %v1695_v29  ;;  %v1747_v29 = vld [vmem:[%s2339_s9 + $0x58] sm:$0xff]  }
0x1441   :  { %1080 = vmatpush1.bf16.msra.mxu0 %v1693_v3  ;;  %v1746_v3 = vld [vmem:[%s2339_s9 + $0x10] sm:$0xff]  }
0x1442   :  { %1081 = vmatprep.subr.bf16.mxu0 %v1698_v15  ;;  %v1749_v15 = vld [vmem:[%s2339_s9 + $0x60] sm:$0xff]  }
0x14a1   :  { %v858_v61 = vpop.permute.xlu1 %857 }
0x14a2   :  { %v860_v62 = vmul.f32 %v858_v61, %v2113_v60  ;;  %v1743_v61 = vld [vmem:[%s2339_s9 + $0x48] sm:$0xff]  }
0x14a4   :  { %862 = vrot.lane.b32.xlu0 %v860_v62, %s1840_s25  ;;  %v1744_v62 = vld [vmem:[%s2339_s9 + $0x8] sm:$0xff]  }
0x14a5   :  { %v607_v63 = vpop.permute.xlu1 %606 }
0x14a6   :  { %609 = vst.msk [vmem:[#allocation2 + $0x8] sm:$0xff] %vm181_vm3, %v607_v63  ;;  %v1745_v63 = vld [vmem:[%s2339_s9 + $0x50] sm:$0xff]  }
0x14a8   :  { %251 = vrot.lane.b32.xlu0 %v1984_v47, %s1840_s25  ;;  %v1696_v47 = vld [vmem:[%s2337_s7 + $0x10] ss:$8 sps:$4 sm:$0xff]  }
0x14a9   :  { %v696_v0 = vpop.permute.xlu1 %695  ;;  %1082 = vmatpush1.bf16.msra.mxu0 %v1696_v47  ;;  %v1750_v47 = vld [vmem:[%s2339_s9 + $0x20] sm:$0xff]  }
0x14aa   :  { %698 = vst.msk [vmem:[#allocation2 + $0x8] sm:$0xff] %vm343_vm4, %v696_v0  ;;  %1083 = vmatprep.subr.bf16.mxu0 %v1701_v1  ;;  %v1748_v0 = vld [vmem:[%s2339_s9 + $0x18] sm:$0xff]   ;;  %v1751_v1 = vld [vmem:[%s2339_s9 + $0x68] sm:$0xff]  }
0x14ad   :  { %1084 = vmatpush1.bf16.msra.mxu0 %v1699_v2  ;;  %v341_v30 = vpop.permute.xlu1 %340  ;;  %v1752_v2 = vld [vmem:[%s2339_s9 + $0x28] sm:$0xff]  }
0x14ae   :  { %1085 = vmatprep.subr.bf16.mxu0 %v1704_v5  ;;  %v1753_v5 = vld [vmem:[%s2339_s9 + $0x70] sm:$0xff]  }
0x14b1   :  { %1086 = vmatpush1.bf16.msra.mxu0 %v1702_v6  ;;  %v431_v37 = vpop.permute.xlu1 %430  ;;  %v1754_v6 = vld [vmem:[%s2339_s9 + $0x30] sm:$0xff]  }
0x14b2   :  { %1087 = vmatprep.subr.bf16.mxu0 %v1707_v7  ;;  %v1755_v7 = vld [vmem:[%s2339_s9 + $0x78] sm:$0xff]  }
0x14b5   :  { %1088 = vmatpush1.bf16.msra.mxu0 %v1705_v8  ;;  %v1756_v8 = vld [vmem:[%s2339_s9 + $0x38] sm:$0xff]  }
0x14b6   :  { %1089 = vmatprep.subr.bf16.mxu0 %v1710_v9  ;;  %v1125_v9 = vlaneseq }
0x14b9   :  { %1090 = vmatpush1.bf16.msra.mxu0 %v1708_v10  ;;  %v1126_v10 = vshrl.u32 %v1125_v9, 7 }
0x14ba   :  { %1091 = vmatprep.subr.bf16.mxu0 %v1713_v11 }
0x14bb   :  { %v1127_v11 = vsub.s32 0, %v1126_v10 }
0x14bd   :  { %1092 = vmatpush1.bf16.msra.mxu0 %v1711_v12  ;;  %v1123_v12 = vld [vmem:[%s2338_s8] sm:$0x3]  ;;  %s1843_s8 = smov [#allocation3]  }
0x14be   :  { %1093 = vmatprep.subr.bf16.mxu0 %v1716_v14  ;;  %v1131_v14 = vsub.s32 1, %v1126_v10 }
0x14c1   :  { %1094 = vmatpush1.bf16.msra.mxu0 %v1714_v16  ;;  %v1128_v16 = vrot.slane %v1123_v12, %v1127_v11 }
0x14c2   :  { %1095 = vmatprep.subr.bf16.mxu0 %v1719_v17  ;;  %v1132_v17 = vrot.slane %v1123_v12, %v1131_v14 }
0x14c5   :  { %1096 = vmatpush1.bf16.msra.mxu0 %v1717_v20 }
0x14c6   :  { %1097 = vmatprep.subr.bf16.mxu0 %v1722_v21 }
0x14c9   :  { %1098 = vmatpush1.bf16.msra.mxu0 %v1720_v23 }
0x14ca   :  { %1099 = vmatprep.subr.bf16.mxu0 %v1725_v18 }
0x14cd   :  { %1100 = vmatpush1.bf16.msra.mxu0 %v1723_v24 }
0x14ce   :  { %1101 = vmatprep.subr.bf16.mxu0 %v1728_v26 }
0x14d1   :  { %1102 = vmatpush1.bf16.msra.mxu0 %v1726_v22 }
0x14d2   :  { %1103 = vmatprep.subr.bf16.mxu0 %v1731_v28 }
0x14d5   :  { %1104 = vmatpush1.bf16.msra.mxu0 %v1729_v32 }
0x14d6   :  { %1105 = vmatprep.subr.bf16.mxu0 %v1734_v34 }
0x14d9   :  { %1106 = vmatpush1.bf16.msra.mxu0 %v1732_v36 }
0x14da   :  { %1107 = vmatprep.subr.bf16.mxu0 %v1737_v39 }
0x14dd   :  { %1108 = vmatpush1.bf16.msra.mxu0 %v1735_v38 }
0x14de   :  { %1109 = vmatprep.subr.bf16.mxu0 %v1740_v40 }
0x14e1   :  { %1110 = vmatpush1.bf16.msra.mxu0 %v1738_v41 }
0x1516   :  { %v863_v31 = vpop.permute.xlu0 %862 }
0x1517   :  { %v865_v33 = vadd.f32 %v863_v31, %v855_v27 }
0x1519   :  { %1787 = vtanh.f32 %v865_v33  ;;  %879 = vrot.lane.b32.xlu1 %v865_v33, %s1841_s4 }
0x151a   :  { %v252_v35 = vpop.permute.xlu0 %251 }
0x151b   :  { %254 = vst.msk [vmem:[#allocation2] sm:$0xff] %vm181_vm3, %v252_v35 }
0x151c   :  { %344 = vst.msk [vmem:[#allocation2] sm:$0xff] %vm343_vm4, %v341_v30 }
0x151d   :  { %434 = vst.msk [vmem:[#allocation2] sm:$0xff] %vm433_vm5, %v431_v37 }
0x151e   :  { %520 = vst.msk [vmem:[#allocation2] sm:$0xff] %vm519_vm6, %v2043_v49 }
0x1523   :  { %v1788_v42 = vpop.eup %1787 }
0x1524   :  { %868 = vrot.lane.b32.xlu0 %v1788_v42, %s1839_s5 }
0x1525   :  { %v883_v45 = vld [vmem:[#allocation2] sm:$0xff] }
0x1526   :  { %v885_v48 = vpack.c.bf16 %v883_v45, %v883_v45 }
0x1528   :  { %784 = vrot.lane.b32.xlu0 %v2098_v51, %s1841_s4 }
0x158b   :  { %v880_v43 = vpop.permute.xlu1 %879 }
0x158c   :  { %882 = vst.msk [vmem:[#allocation5] sm:$0xff] %vm181_vm3, %v880_v43 }
0x1596   :  { %v869_v44 = vpop.permute.xlu0 %868 }
0x1597   :  { %v871_v49 = vmul.f32 %v869_v44, %v2113_v60  ;;  %v1742_v60 = vld [vmem:[%s2339_s9] sm:$0xff]   ;;  %s1419_s9 = sshll.u32 %s1843_s8, 4  ;;  %s1420_s9 = int_to_ptr.vmem [resolvable:$true] %s1419_s9 }
0x1598   :  { %s1789_s26 = scalar_lea.vmem %s1420_s9, 128  ;;  %p1794_p1 = scmp.lt.s32.totalorder %s1420_s9, %s1420_s9 }
0x1599   :  { %874 = vrot.lane.b32.xlu0 %v871_v49, %s1840_s25  ;;  %p1790_p0 = scmp.ne.s32.totalorder %s1420_s9, %s1789_s26  ;;  %p1795_p2 = scmp.lt.s32.totalorder %s1789_s26, %s1789_s26 }
0x159a   :  { %v785_v25 = vpop.permute.xlu0 %784 }
0x159b   :  { %787 = vst.msk [vmem:[#allocation2 + $0x8] sm:$0xff] %vm433_vm5, %v785_v25  ;;  %p1796_p3 = por %p1795_p2, %p1794_p1 }
0x159c   :  { %872 = vst.msk [vmem:[#allocation2 + $0x8] sm:$0xff] %vm519_vm6, %v871_v49 }
0x159d   :  { %p1797_p4 = pnand %p1796_p3, %p1790_p0 }
0x15a3   :  { %v884_v13 = vld [vmem:[#allocation2 + $0x8] sm:$0xff] }
0x15a4   :  { %v886_v46 = vpack.c.bf16 %v884_v13, %v884_v13 }
0x15a6   :  { %1111 = vmatprep.mubr.bf16.mxu0 %v886_v46 }
0x15a7   :  { %1112 = vmatmul.mubr.bf16.vlgmr.msra.gmra.mrb[16].mxu0 %v885_v48 }
0x160b   :  { %v875_v51 = vpop.permute.xlu0 %874 }
0x160c   :  { %877 = vst.msk [vmem:[#allocation3] sm:$0xff] %vm181_vm3, %v875_v51 }
0x167a   :  { %v1113_v52 = vpop.f32.mrb[16].mxu0 }
0x167b   :  { %v1121_v53 = vpack.c.bf16 %v1113_v52, %v1113_v52  ;;  %v1115_v54 = vpop.f32.mrb[17].mxu0 }
0x167c   :  { %v1122_v55 = vpack.c.bf16 %v1115_v54, %v1115_v54  ;;  %v1117_v56 = vpop.f32.mrb[18].mxu0 }
0x167d   :  { %v1141_v58 = vsel %vm1139_vm7, %v1121_v53, 0  ;;  %v1118_v59 = vpop.f32.mrb[19].mxu0 }
0x167e   :  { %1508 = vmatprep.subr.msk.bf16.mxu1 %vm1139_vm7, %v1122_v55 }
0x167f   :  { %1147 = vmatpush1.bf16.msra.mxu1 %v1141_v58 }
0x1680   :  { %1557 = vmatprep.subr.bf16.mxu1 %v1741_v57 }
0x1682   :  { %1509 = vmatmul.mubr.msk.bf16.vlgmr.msra.gmra.mrb[24].mxu1 %vm1135_vm8, %v2242_v19 }
0x1683   :  { %1558 = vmatpush3.bf16.msra.mxu1 %v1742_v60 }
0x1684   :  { %1559 = vmatprep.subr.bf16.mxu1 %v1743_v61 }
0x1687   :  { %1560 = vmatpush3.bf16.msra.mxu1 %v1744_v62 }
0x1688   :  { %1561 = vmatprep.subr.bf16.mxu1 %v1745_v63 }
0x168b   :  { %1562 = vmatpush3.bf16.msra.mxu1 %v1746_v3 }
0x168c   :  { %1563 = vmatprep.subr.bf16.mxu1 %v1747_v29 }
0x168f   :  { %1564 = vmatpush3.bf16.msra.mxu1 %v1748_v0 }
0x1690   :  { %1565 = vmatprep.subr.bf16.mxu1 %v1749_v15 }
0x1693   :  { %1566 = vmatpush3.bf16.msra.mxu1 %v1750_v47 }
0x1694   :  { %1567 = vmatprep.subr.bf16.mxu1 %v1751_v1 }
0x1697   :  { %1568 = vmatpush3.bf16.msra.mxu1 %v1752_v2 }
0x1698   :  { %1569 = vmatprep.subr.bf16.mxu1 %v1753_v5 }
0x169b   :  { %1570 = vmatpush3.bf16.msra.mxu1 %v1754_v6 }
0x169c   :  { %1571 = vmatprep.subr.bf16.mxu1 %v1755_v7 }
0x169f   :  { %1572 = vmatpush3.bf16.msra.mxu1 %v1756_v8 }
0x16a0   :  { %1655 = vmatprep.subr.bf16.mxu1 %v1837_v4 }
0x1755   :  { %v1180_v20 = vpop.f32.mrb[24].mxu1 }
0x1756   :  { %v1181_v21 = vadd.f32 %v1180_v20, %v1128_v16  ;;  %v1182_v23 = vpop.f32.mrb[25].mxu1 }
0x1757   :  { %v1183_v24 = vadd.f32 %v1182_v23, %v1132_v17  ;;  %v1184_v18 = vpop.f32.mrb[26].mxu1 }
0x1758   :  { %v1187_v26 = vmax.f32 %v1181_v21, 0.0  ;;  %v1185_v22 = vpop.f32.mrb[27].mxu1 }
0x1759   :  { %v1188_v27 = vmax.f32 %v1183_v24, 0.0 }
0x175a   :  { %v1189_v30 = vpack.c.bf16 %v1187_v26, %v1187_v26 }
0x175b   :  { %v1190_v28 = vpack.c.bf16 %v1188_v27, %v1188_v27 }
0x175d   :  { %1351 = vmatprep.mubr.bf16.mxu1 %v1190_v28 }
0x175e   :  { %1352 = vmatmul.mubr.bf16.vlgmr.msra.gmra.mrb[28].mxu1 %v1189_v30 }
0x175f   :  { %1657 = vmatprep.mubr.msk.bf16.mxu1 %vm1838_vm2, %v1837_v4 }
0x1831   :  { %v1573_v31 = vpop.f32.mrb[28].mxu1 }
0x1832   :  { %v1574_v32 = vpop.f32.mrb[29].mxu1 }
0x1833   :  { %v1575_v33 = vadd.f32 %v1574_v32, %v1573_v31  ;;  %v1576_v34 = vpop.f32.mrb[30].mxu1 }
0x1834   :  { %v1577_v35 = vpop.f32.mrb[31].mxu1 }
0x1835   :  { %v1359_v36 = vpack.c.bf16 %v1575_v33, %v1575_v33 }
0x1837   :  { %v1368_v37 = vsel %vm1139_vm7, %v1359_v36, 0 }
0x1838   :  { %1656 = vmatpush3.bf16.msra.mxu1 %v1368_v37 }
0x183b   :  { %1658 = vmatmul.mubr.msk.bf16.vlgmr.msra.gmra.mrb[32].mxu1 %vm1135_vm8, %v2242_v19 }
0x183c   :  { %1800 = shalt.err (!%p1797_p4)
}
0x183d   :  { %s1801_s28 = scalar_lea.hbm %s2342_s12, 128 }
0x183e   :  { %p1802_p5 = scmp.ne.s32.totalorder %s2342_s12, %s1801_s28  ;;  %p1805_p6 = scmp.lt.u32.totalorder %s1801_s28, %s2342_s12 }
0x1840   :  { %p1807_p7 = pnand %p1805_p6, %p1802_p5 }
0x1842   :  { %1810 = shalt.err (!%p1807_p7)
}
0x1843   :  { %1422 = dma.vmem_to_hbm [thread:$0]  %s1420_s9, 128, %s2342_s12, [#allocation4]  }
0x1844   :  { %s1811_s17 = scalar_lea.vmem %s1430_s24, 128  ;;  %p1816_p9 = scmp.lt.s32.totalorder %s1430_s24, %s1430_s24 }
0x1845   :  { %p1812_p8 = scmp.ne.s32.totalorder %s1430_s24, %s1811_s17  ;;  %p1817_p10 = scmp.lt.s32.totalorder %s1811_s17, %s1811_s17 }
0x1847   :  { %p1818_p11 = por %p1817_p10, %p1816_p9 }
0x1849   :  { %p1819_p12 = pnand %p1818_p11, %p1812_p8 }
0x184b   :  { %1822 = shalt.err (!%p1819_p12)
}
0x184c   :  { %s1823_s5 = scalar_lea.hbm %s2343_s13, 128 }
0x184d   :  { %p1824_p13 = scmp.ne.s32.totalorder %s2343_s13, %s1823_s5  ;;  %p1827_p0 = scmp.lt.u32.totalorder %s1823_s5, %s2343_s13 }
0x184f   :  { %p1829_p1 = pnand %p1827_p0, %p1824_p13 }
0x1851   :  { %1832 = shalt.err (!%p1829_p1)
}
0x1852   :  { %1432 = dma.vmem_to_hbm [thread:$0]  %s1430_s24, 128, %s2343_s13, [#allocation6]   ;;  %v1526_v4 = vld [vmem:[%s2340_s10] ss:$0 sm:$0xff] }
0x190e   :  { %v1404_v38 = vpop.f32.mrb[32].mxu1 }
0x190f   :  { %v1405_v39 = vadd.f32 %v1526_v4, %v1404_v38  ;;  %v1659_v40 = vpop.f32.mrb[33].mxu1 }
0x1910   :  { %v1407_v41 = vpop.f32.mrb[34].mxu1 }
0x1911   :  { %1410 = vst [vmem:[%s2341_s11] sm:$0xff] %v1405_v39  ;;  %v1660_v42 = vpop.f32.mrb[35].mxu1 }
0x1912   :  { %1833 = dma.done.wait [#allocation4], 128  }
0x1913   :  { %1834 = vsyncadd [#allocation4], 4294967168 }
0x1914   :  { %1835 = dma.done.wait [#allocation6], 128  }
0x1915   :  { %1836 = vsyncadd [#allocation6], 4294967168 }
0x1916   :  { %1441 = vsyncpa [#allocation4], 1 }
0x1917   :  { %1442 = vsyncpa [#allocation6], 1 }

</bundles_post_ra>
